<compile_context>
chip_gen: v5e
topology: v5e:2x2
jax: 0.10.0
libtpu: 0.0.40
codegen_flags: <defaults>
</compile_context>

<pallas_src>
import functools

import jax
import jax.numpy as jnp
from jax.experimental import pallas as pl
from jax.experimental.pallas import tpu as pltpu

LANE = 128
NUM_CATS = 10
FONT_SIZE = 32
EMB_DIM = 128
FC_OUT_SIZE = 40960  # = (512 + 128) * 8 * 8, as in the PyTorch module

LOSS_W = {"Category": 1.0, "L1": 100.0, "Cheat": 1.0, "Constant": 15.0, "Type": 1.0}


# ----------------------------------------------------------------------------
# Pallas kernels
# ----------------------------------------------------------------------------
def _apply_act(y, activation):
    if activation == "lrelu":
        y = jnp.where(y > 0, y, 0.2 * y)
    elif activation == "tanh":
        y = jnp.tanh(y)
    elif activation == "sigmoid":
        y = 1.0 / (1.0 + jnp.exp(-y))
    return y


def _dense_kernel_1k(x_ref, w_ref, b_ref, o_ref, *, activation):
    # Single full-K matmul; x cast to the weight dtype (bf16 for the wide-K
    # heads), f32 accumulation on the MXU, f32 bias + activation epilogue.
    y = jnp.dot(x_ref[...].astype(w_ref.dtype), w_ref[...],
                preferred_element_type=jnp.float32)
    y = y + b_ref[...]
    o_ref[...] = _apply_act(y, activation).astype(o_ref.dtype)


def _dense_kernel_ktiled(x_ref, w_ref, b_ref, o_ref, acc_ref, *, activation):
    k = pl.program_id(0)

    @pl.when(k == 0)
    def _():
        acc_ref[...] = jnp.zeros_like(acc_ref)

    acc_ref[...] += jnp.dot(x_ref[...].astype(w_ref.dtype), w_ref[...],
                            preferred_element_type=jnp.float32)

    @pl.when(k == pl.num_programs(0) - 1)
    def _():
        y = acc_ref[...] + b_ref[...]
        o_ref[...] = _apply_act(y, activation).astype(o_ref.dtype)


def pallas_dense(x, w, b, activation=None):
    """out = act(x @ w + b). x:(M,K) f32, w:(K,N) f32/bf16, b:(N,) f32."""
    M, K = x.shape
    K2, N = w.shape
    assert K == K2
    bytes_full = M * K * x.dtype.itemsize + K * N * w.dtype.itemsize
    if bytes_full <= 12 * (1 << 20):
        # Single-K path (all layers of this model take it). M-tiled + "parallel"
        # for the M=2048 layers so both v7x TensorCores are used.
        tm = 1024 if (M > 1024 and M % 1024 == 0) else M
        kernel = functools.partial(_dense_kernel_1k, activation=activation)
        return pl.pallas_call(
            kernel,
            out_shape=jax.ShapeDtypeStruct((M, N), jnp.float32),
            grid=(M // tm,),
            in_specs=[
                pl.BlockSpec((tm, K), lambda i: (i, 0)),
                pl.BlockSpec((K, N), lambda i: (0, 0)),
                pl.BlockSpec((1, N), lambda i: (0, 0)),
            ],
            out_specs=pl.BlockSpec((tm, N), lambda i: (i, 0)),
            compiler_params=pltpu.CompilerParams(
                dimension_semantics=("parallel",)),
        )(x, w, b.reshape(1, N))

    # Fallback: K-tiled with VMEM accumulator (not hit at these model sizes).
    tk = 2048
    assert K % tk == 0
    kernel = functools.partial(_dense_kernel_ktiled, activation=activation)
    return pl.pallas_call(
        kernel,
        out_shape=jax.ShapeDtypeStruct((M, N), jnp.float32),
        grid=(K // tk,),
        in_specs=[
            pl.BlockSpec((M, tk), lambda k: (0, k)),
            pl.BlockSpec((tk, N), lambda k: (k, 0)),
            pl.BlockSpec((1, N), lambda k: (0, 0)),
        ],
        out_specs=pl.BlockSpec((M, N), lambda k: (0, 0)),
        scratch_shapes=[pltpu.VMEM((M, N), jnp.float32)],
        compiler_params=pltpu.CompilerParams(
            dimension_semantics=("arbitrary",)),
    )(x, w, b.reshape(1, N))


def _loss_kernel(real_cate_ref, fake_cate_ref, pred_type_ref, cat_ref, typ_ref,
                 rp_ref, fp_ref, fi_ref, ti_ref, re_ref, cemb_ref, o_ref):
    """All loss reductions fused into one launch. Output: (1,8) f32 in SMEM:
       [real_ce, fake_ce, type_ce, bce(real,1), bce(fake,0), bce(fake,1),
        l1(fake,target), l1(real_embed, cycle_embed)]."""
    eps = 1e-12

    def ce_mean(logits, labels):
        m = jnp.max(logits, axis=-1, keepdims=True)
        lse = m + jnp.log(jnp.sum(jnp.exp(logits - m), axis=-1, keepdims=True))
        col = jax.lax.broadcasted_iota(jnp.int32, logits.shape, 1)
        onehot = (col == labels).astype(jnp.float32)
        picked = jnp.sum(logits * onehot, axis=-1, keepdims=True)
        return jnp.sum(lse - picked) / float(logits.shape[0])

    rc = real_cate_ref[...]
    fc = fake_cate_ref[...]
    pt = pred_type_ref[...]
    cat = cat_ref[...]
    typ = typ_ref[...]
    rp = rp_ref[...]
    fp = fp_ref[...]
    fi = fi_ref[...]
    ti = ti_ref[...]
    re = re_ref[...]
    cemb = cemb_ref[...]

    o_ref[0, 0] = ce_mean(rc, cat)
    o_ref[0, 1] = ce_mean(fc, cat)
    o_ref[0, 2] = ce_mean(pt, typ)
    o_ref[0, 3] = jnp.sum(-jnp.log(jnp.maximum(rp, eps))) / float(rp.size)
    o_ref[0, 4] = jnp.sum(-jnp.log(jnp.maximum(1.0 - fp, eps))) / float(fp.size)
    o_ref[0, 5] = jnp.sum(-jnp.log(jnp.maximum(fp, eps))) / float(fp.size)
    o_ref[0, 6] = jnp.sum(jnp.abs(fi - ti)) / float(fi.size)
    o_ref[0, 7] = jnp.sum(jnp.abs(re - cemb)) / float(re.size)


def fused_losses(real_cate, fake_cate, pred_type, cat_id, type_id,
                 real_patch, fake_patch, fake_img, target_img,
                 real_embed, cycle_embed):
    B = real_cate.shape[0]
    ins = [
        real_cate,                                     # (B, NUM_CATS)
        fake_cate,                                     # (B, NUM_CATS)
        pred_type,                                     # (B, FONT_SIZE)
        cat_id.reshape(B, 1).astype(jnp.int32),        # (B, 1)
        type_id.reshape(B, 1).astype(jnp.int32),       # (B, 1)
        real_patch.reshape(B, -1),                     # (B, 64)
        fake_patch.reshape(B, -1),                     # (B, 64)
        fake_img.reshape(B, -1),                       # (B, 4096)
        target_img.reshape(B, -1),                     # (B, 4096)
        real_embed.reshape(B * 64, -1),                # (B*64, 512)
        cycle_embed.reshape(B * 64, -1),               # (B*64, 512)
    ]
    out = pl.pallas_call(
        _loss_kernel,
        out_shape=jax.ShapeDtypeStruct((1, 8), jnp.float32),
        grid=(1,),
        in_specs=[pl.BlockSpec(a.shape, lambda i: (0, 0)) for a in ins],
        out_specs=pl.BlockSpec(memory_space=pltpu.MemorySpace.SMEM),
    )(*ins)
    return out[0]


# ----------------------------------------------------------------------------
# Glue: conv layers as Pallas matmuls (NHWC), upsampling, parameter init
# ----------------------------------------------------------------------------
def pad_to_lane(n):
    return ((n + LANE - 1) // LANE) * LANE


def conv_s2(x, w, b, act):
    """2x2 stride-2 conv (non-overlapping) via space-to-depth + Pallas matmul.
    x: (B,H,W,C) NHWC -> (B,H/2,W/2,Cout)."""
    B, H, W, C = x.shape
    p = x.reshape(B, H // 2, 2, W // 2, 2, C)
    p = p.transpose(0, 1, 3, 2, 4, 5).reshape(B * (H // 2) * (W // 2), 4 * C)
    y = pallas_dense(p, w, b, act)
    return y.reshape(B, H // 2, W // 2, w.shape[1])


def conv1x1(x, w, b, act):
    B, H, W, C = x.shape
    y = pallas_dense(x.reshape(B * H * W, C), w, b, act)
    return y.reshape(B, H, W, w.shape[1])


def upsample2x(x):  # nearest-neighbor, NHWC
    x = jnp.repeat(x, 2, axis=1)
    return jnp.repeat(x, 2, axis=2)


def init_dense(key, k_in, n_real, dtype=jnp.float32, pad_out=True):
    """Weight (k_in, n_pad) with zero-padded output columns so downstream
    activations stay lane-dense; zero bias. Padded channels are exactly 0
    after lrelu/tanh so later layers are unaffected."""
    n_pad = pad_to_lane(n_real) if pad_out else n_real
    w = jax.random.normal(key, (k_in, n_real), jnp.float32) / jnp.sqrt(float(k_in))
    if n_pad > n_real:
        w = jnp.pad(w, ((0, 0), (0, n_pad - n_real)))
    b = jnp.zeros((n_pad,), jnp.float32)
    return w.astype(dtype), b


# ----------------------------------------------------------------------------
# Synthetic zi2zi sub-networks (encoder / decoder / discriminator / embedding)
# ----------------------------------------------------------------------------
def make_params(key):
    ks = jax.random.split(key, 16)
    p = {}
    # encoder: 1 -> 16(->128 pad) -> 64(->128) -> 512, spatial 64 -> 32 -> 16 -> 8
    p["e1_w"], p["e1_b"] = init_dense(ks[0], 1 * 4, 16)
    p["e2_w"], p["e2_b"] = init_dense(ks[1], 4 * 128, 64)
    p["e3_w"], p["e3_b"] = init_dense(ks[2], 4 * 128, 512)
    # decoder (U-Net style, 1x1 conv at low res -> nearest upsample -> skip concat)
    p["d1_w"], p["d1_b"] = init_dense(ks[3], 640, 64)
    p["d2_w"], p["d2_b"] = init_dense(ks[4], 256, 16)
    p["d3_w"], p["d3_b"] = init_dense(ks[5], 256, 1)
    # discriminator on cat(img_a, img_b) -> patch map + category logits
    p["c1_w"], p["c1_b"] = init_dense(ks[6], 2 * 4, 16)
    p["c2_w"], p["c2_b"] = init_dense(ks[7], 4 * 128, 64)
    p["c3_w"], p["c3_b"] = init_dense(ks[8], 4 * 128, 128)
    p["patch_w"], p["patch_b"] = init_dense(ks[9], 128, 1)
    # wide-K heads: bf16 weights (bandwidth bound), unpadded narrow N
    p["cate_w"], p["cate_b"] = init_dense(ks[10], 128 * 8 * 8, NUM_CATS,
                                          dtype=jnp.bfloat16, pad_out=False)
    p["emb"] = jax.random.normal(ks[11], (NUM_CATS, EMB_DIM), jnp.float32)
    p["type_fc_w"], p["type_fc_b"] = init_dense(ks[12], FC_OUT_SIZE, FONT_SIZE,
                                                dtype=jnp.bfloat16, pad_out=False)
    return p


def encoder_fwd(p, x):
    # x: (B,64,64,C) NHWC
    f1 = conv_s2(x, p["e1_w"], p["e1_b"], "lrelu")    # (B,32,32,128) [16 real ch]
    f2 = conv_s2(f1, p["e2_w"], p["e2_b"], "lrelu")   # (B,16,16,128) [64 real ch]
    f3 = conv_s2(f2, p["e3_w"], p["e3_b"], "lrelu")   # (B, 8, 8,512)
    global_embed = jnp.mean(f3, axis=(1, 2))
    return [f1, f2, f3], global_embed


def decoder_fwd(p, feat_list):
    f1, f2, fcat = feat_list                                        # fcat: (B,8,8,640)
    # upsample commuted past the 1x1 convs: matmul at low res, then repeat
    d1 = upsample2x(conv1x1(fcat, p["d1_w"], p["d1_b"], "lrelu"))   # (B,16,16,128)
    d1 = jnp.concatenate([d1, f2], axis=-1)                         # (B,16,16,256)
    d2 = upsample2x(conv1x1(d1, p["d2_w"], p["d2_b"], "lrelu"))     # (B,32,32,128)
    d2 = jnp.concatenate([d2, f1], axis=-1)                         # (B,32,32,256)
    d3 = conv1x1(d2, p["d3_w"], p["d3_b"], "tanh")                  # (B,32,32,128) [1 real]
    return upsample2x(d3[..., :1])                                  # (B,64,64,1)


def discrim_fwd(p, x):
    # x: (B,64,64,2) NHWC
    B = x.shape[0]
    c1 = conv_s2(x, p["c1_w"], p["c1_b"], "lrelu")                  # (B,32,32,128)
    c2 = conv_s2(c1, p["c2_w"], p["c2_b"], "lrelu")                 # (B,16,16,128)
    c3 = conv_s2(c2, p["c3_w"], p["c3_b"], "lrelu")                 # (B, 8, 8,128)
    patch = conv1x1(c3, p["patch_w"], p["patch_b"], "sigmoid")[..., :1]   # (B,8,8,1)
    cate = pallas_dense(c3.reshape(B, -1), p["cate_w"], p["cate_b"])      # (B,NUM_CATS)
    return patch, cate


# ----------------------------------------------------------------------------
# Z2Z_Type.forward  (opts.fake_emb = False branch)
# ----------------------------------------------------------------------------
def z2z_type_forward(params, data):
    cat_id = data["cat_id"]
    type_id = data["type_id"]
    input_img = data["imgs"]       # NCHW, like the PyTorch module
    target_img = data["targets"]
    b = input_img.shape[0]

    # single NCHW -> NHWC relayout at the boundary; everything else stays NHWC
    x = jnp.transpose(input_img, (0, 2, 3, 1))     # (B,64,64,1)
    t = jnp.transpose(target_img, (0, 2, 3, 1))    # (B,64,64,1)

    feat_list, _global_embed = encoder_fwd(params, x)
    real_embed = feat_list[-1]                                   # (B,8,8,512), pre-concat
    cat_embed = params["emb"][cat_id]                            # XLA gather, (B,128)
    cat_embed = jnp.broadcast_to(cat_embed[:, None, None, :], (b, 8, 8, EMB_DIM))
    feat_cat = jnp.concatenate([feat_list[-1], cat_embed], axis=-1)   # (B,8,8,640)
    feat_list = [feat_list[0], feat_list[1], feat_cat]

    pred_type_id = pallas_dense(feat_cat.reshape(b, -1),
                                params["type_fc_w"], params["type_fc_b"])
    fake_img = decoder_fwd(params, feat_list)                    # (B,64,64,1) NHWC

    # --- discriminator pass (D "update" phase, no actual optimizer step) ---
    real_patch, real_cate = discrim_fwd(params, jnp.concatenate([x, t], axis=-1))
    fake_patch, fake_cate = discrim_fwd(params, jnp.concatenate([x, fake_img], axis=-1))
    # TODO(synk): loss_d.backward(); dis_optimizer.step() omitted (no grad step), so the
    # PyTorch third discriminator call is bit-identical to the second and is reused below.

    # --- generator pass (G "update" phase) ---
    cycle_feat, _ = encoder_fwd(params, fake_img)

    losses = fused_losses(real_cate, fake_cate, pred_type_id, cat_id, type_id,
                          real_patch, fake_patch, fake_img, t,
                          real_embed, cycle_feat[-1])
    real_category_loss = losses[0]
    fake_category_loss = losses[1]
    type_ce = losses[2]
    bce_real_ones = losses[3]
    bce_fake_zeros = losses[4]
    bce_fake_ones = losses[5]
    l1_img = losses[6]
    l1_emb = losses[7]

    category_loss = LOSS_W["Category"] * (real_category_loss + fake_category_loss)
    discrim_loss = bce_real_ones + bce_fake_zeros
    loss_d = discrim_loss + category_loss / 2.0

    const_loss = LOSS_W["Constant"] * l1_emb ** 2
    l1_loss = LOSS_W["L1"] * l1_img
    cheat_loss = LOSS_W["Cheat"] * bce_fake_ones
    type_loss = LOSS_W["Type"] * type_ce
    loss_g = (type_loss + cheat_loss + l1_loss
              + LOSS_W["Category"] * fake_category_loss + const_loss)
    # TODO(synk): loss_g.backward(); gen_optimizer.step() omitted (no grad step).

    fake_img_nchw = jnp.transpose(fake_img, (0, 3, 1, 2))        # back to NCHW

    loss_dict = {
        "cheat_loss": cheat_loss,
        "l1_loss": l1_loss,
        "fake_category_loss": fake_category_loss,
        "real_category_loss": real_category_loss,
        "discrim_loss": discrim_loss,
        "const_loss": const_loss,
        "type_loss": type_loss,
        "loss_g": loss_g,
        "loss_d": loss_d,
    }
    return loss_d, loss_g, fake_img_nchw, loss_dict


# ----------------------------------------------------------------------------
if __name__ == "__main__":
    key = jax.random.PRNGKey(0)
    pkey, k1, k2, k3, k4 = jax.random.split(key, 5)

    params = make_params(pkey)

    B, C, H, W = 2, 1, 64, 64
    data = {
        "imgs": jax.random.uniform(k1, (B, C, H, W), jnp.float32, -1.0, 1.0),
        "targets": jax.random.uniform(k2, (B, C, H, W), jnp.float32, -1.0, 1.0),
        "cat_id": jax.random.randint(k3, (B,), 0, NUM_CATS, jnp.int32),
        "type_id": jax.random.randint(k4, (B,), 0, FONT_SIZE, jnp.int32),
    }

    loss_d, loss_g, fake_img, loss_dict = z2z_type_forward(params, data)
    jax.block_until_ready((loss_d, loss_g, fake_img))
    assert fake_img.shape == (B, C, H, W)
    assert jnp.isfinite(loss_d) and jnp.isfinite(loss_g)
    print("KERNEL_OK")
</pallas_src>

<mosaic_0001>
module attributes {stable_mosaic.version = 11 : i64} {
  func.func @_dense_kernel_1k(%arg0: i32, %arg1: memref<1024x4xf32, #tpu.memory_space<vmem>>, %arg2: memref<4x128xf32, #tpu.memory_space<vmem>>, %arg3: memref<1x128xf32, #tpu.memory_space<vmem>>, %arg4: memref<1024x128xf32, #tpu.memory_space<vmem>>) attributes {dimension_semantics = [#tpu.dimension_semantics<parallel>], iteration_bounds = array<i64: 2>, scalar_prefetch = 0 : i64, scratch_operands = 0 : i64, tpu.core_type = #tpu.core_type<tc>, window_params = [{transform_indices = @transform_0, window_bounds = array<i64: 1024, 4>}, {pipeline_mode = #tpu.pipeline_mode<synchronous>, transform_indices = @transform_1, window_bounds = array<i64: 4, 128>}, {pipeline_mode = #tpu.pipeline_mode<synchronous>, transform_indices = @transform_2, window_bounds = array<i64: 1, 128>}, {transform_indices = @transform_3, window_bounds = array<i64: 1024, 128>}]} {
    %c0 = arith.constant 0 : index
    %c0_0 = arith.constant 0 : index
    %0 = vector.load %arg1[%c0, %c0_0] : memref<1024x4xf32, #tpu.memory_space<vmem>>, vector<1024x4xf32>
    %c0_1 = arith.constant 0 : index
    %c0_2 = arith.constant 0 : index
    %1 = vector.load %arg2[%c0_1, %c0_2] : memref<4x128xf32, #tpu.memory_space<vmem>>, vector<4x128xf32>
    %cst = arith.constant dense<0.000000e+00> : vector<1024x128xf32>
    %2 = tpu.matmul %0, %1, %cst {dimension_numbers = #tpu.dot_dimension_numbers<[1], [0], [0], [1], [0, 0, 1, 1], [], []>} : vector<1024x4xf32>, vector<4x128xf32>, vector<1024x128xf32> -> vector<1024x128xf32>
    %c0_3 = arith.constant 0 : index
    %c0_4 = arith.constant 0 : index
    %3 = vector.load %arg3[%c0_3, %c0_4] : memref<1x128xf32, #tpu.memory_space<vmem>>, vector<1x128xf32>
    %4 = vector.broadcast %3 : vector<1x128xf32> to vector<1024x128xf32>
    %5 = arith.addf %2, %4 : vector<1024x128xf32>
    %cst_5 = arith.constant 0.000000e+00 : f32
    %6 = vector.broadcast %cst_5 : f32 to vector<1024x128xf32>
    %7 = arith.cmpf ogt, %5, %6 : vector<1024x128xf32>
    %cst_6 = arith.constant 2.000000e-01 : f32
    %8 = vector.broadcast %cst_6 : f32 to vector<1024x128xf32>
    %9 = arith.mulf %8, %5 : vector<1024x128xf32>
    %10 = arith.select %7, %5, %9 : vector<1024x128xi1>, vector<1024x128xf32>
    %c0_7 = arith.constant 0 : index
    %c0_8 = arith.constant 0 : index
    %11 = vector.load %arg4[%c0_7, %c0_8] : memref<1024x128xf32, #tpu.memory_space<vmem>>, vector<1024x128xf32>
    tpu.vector_store %arg4[%c0_7, %c0_8], %10 {strides = array<i32>} : memref<1024x128xf32, #tpu.memory_space<vmem>>, vector<1024x128xf32>,
    return
  }
  func.func @transform_0(%arg0: i32) -> (i32, i32) {
    %c0_i32 = arith.constant 0 : i32
    %c0_i32_0 = arith.constant 0 : i32
    return %arg0, %c0_i32 : i32, i32
  }
  func.func @transform_1(%arg0: i32) -> (i32, i32) {
    %c0_i32 = arith.constant 0 : i32
    %c0_i32_0 = arith.constant 0 : i32
    %c0_i32_1 = arith.constant 0 : i32
    return %c0_i32, %c0_i32_0 : i32, i32
  }
  func.func @transform_2(%arg0: i32) -> (i32, i32) {
    %c0_i32 = arith.constant 0 : i32
    %c0_i32_0 = arith.constant 0 : i32
    %c0_i32_1 = arith.constant 0 : i32
    return %c0_i32, %c0_i32_0 : i32, i32
  }
  func.func @transform_3(%arg0: i32) -> (i32, i32) {
    %c0_i32 = arith.constant 0 : i32
    %c0_i32_0 = arith.constant 0 : i32
    return %arg0, %c0_i32 : i32, i32
  }
}

</mosaic_0001>

<bundles_post_ra>
// kernel: tpu_custom_call.1
= control target key start
LH: loop header
LB: loop body
LE: loop exit
PB: predicated region body
PF: predicated region fallthrough
CT: control target
= control target key end

     0   :  { %8 = vsyncpa [#allocation3], 0  ;;  %s2577_s0 = inlined_call_operand.vmem [shape: f32[2048,4], index: 0, kind: input, shape index: {}]   ;;  %s2578_s1 = inlined_call_operand.vmem [shape: f32[4,128], index: 1, kind: input, shape index: {}]   ;;  %s2579_s2 = inlined_call_operand.vmem [shape: f32[1,128], index: 2, kind: input, shape index: {}]   ;;  %s2580_s3 = inlined_call_operand.hbm [shape: f32[2048,128], index: 3, kind: output, shape index: {}]  }
   0x1   :  { %10 = vsyncpa [#allocation3 + $0x1], 0  ;;  %s1959_s12 = smov 0   ;;  %s1961_s13 = smov 0  }
   0x2   :  { %s1963_s14 = smov 0   ;;  %s1965_s15 = smov 0  }
   0x3 LB: > { %s1980_s16 = sadd.s32 4294967295, %s1935_s15   ;;  %s1685_s17 = sadd.s32 4294967294, %s1935_s15   ;;  %s1935_s15 = sphi %s1965_s15, %s2586_s15   ;;  %s1931_s14 = sphi %s1963_s14, %s2585_s14   ;;  %s1927_s13 = sphi %s1961_s13, %s2584_s13   ;;  %s1923_s12 = sphi %s1959_s12, %s2583_s12  }
   0x4   : > { %s1984_s18 = sadd.s32 1, %s1935_s15   ;;  %s91_s19 = sadd.s32 1, %s1931_s14 }
   0x5   : > { %s88_s20 = ssub.s32 %s1935_s15, %s1984_s18  ;;  %p101_p0 = scmp.ne.s32.totalorder %s1931_s14, %s1927_s13 }
   0x6   : > { %p89_p1 = scmp.eq.s32.totalorder %s88_s20, 0  ;;  %p102_p2 = scmp.eq.s32.totalorder %s1980_s16, 1 }
   0x7   : > { %p107_p3 = scmp.ne.s32.totalorder %s1927_s13, %s1923_s12  ;;  %p108_p4 = scmp.eq.s32.totalorder %s1685_s17, 1 }
   0x8   : > { %s1995_s21 = scalar_select %p89_p1, %s1931_s14, %s91_s19  }
   0x9   : > { %p1997_p5 = por %p102_p2, %p101_p0  ;;  %p2001_p6 = por %p108_p4, %p107_p3 }
   0xa   : > { %p1688_p7 = scmp.ge.s32.totalorder %s1935_s15, 1  ;;  %p141_p8 = scmp.lt.s32.totalorder %s1935_s15, 3 }
   0xc   : > { %p142_p9 = pnand %p1688_p7, %p141_p8 }
   0xd   : > { %s1690_s26 = sshll.u32 (!%p142_p9), %s1980_s16, 7  ;;  %s162_s4 = sand.u32 (!%p142_p9), 1, %s1927_s13  }
   0xe   : > { %145 = sbr.rel (%p142_p9) target bundleno = 413 (0x19d), region = 32  ;;  %p166_p10 = scmp.lt.s32.totalorder (!%p142_p9), %s1690_s26, 255 }
   0xf   : > { %s1689_s7 = sshll.u32 (!%p142_p9), %s162_s4, 10  ;;  %s1826_s11 = sshll.u32 (!%p142_p9), %s1980_s16, 10 }
  0x10   : > { %s2162_s8 = scalar_lea.vmem (!%p142_p9), [#allocation2], %s1689_s7  ;;  %s1619_s20 = scalar_lea.hbm (!%p142_p9), %s2580_s3, %s1826_s11 }
  0x11   : > { %s1620_s16 = sshll.u32 (!%p142_p9), %s2162_s8, 4  ;;  %s1622_s24 = sshll.u32 (!%p142_p9), %s1619_s20, 4  ;;  %s1621_s16 = int_to_ptr.vmem [resolvable:$true] %s1620_s16  ;;  %s1623_s24 = int_to_ptr.hbm [resolvable:$true] %s1622_s24 }
  0x12   : > { %s1608_s25 = scalar_lea.sflag (!%p142_p9), [#allocation3], %s162_s4 }
  0x13   : > { %v300_v0 = vld [vmem:[%s2578_s1] sm:$0xf]  ;;  %vm690_vm0 = vcmask 1043456   ;;  %s2588_s26 = smov (!%p166_p10, %s1690_s26), 255  ;;  %vm305_vm1 = vcmask 31744  }
  0x14   : > { %1828 = vmatpush.msk.msra.mxu2 %vm690_vm0, %v300_v0  ;;  %1829 = vmatpush.msk.msra.mxu3 %vm690_vm0, %v300_v0  ;;  %s1691_s27 = sshll.u32 %s2588_s26, 3  ;;  %s1887_s26 = sshra.s32 %s1623_s24, 4  ;;  %s1888_s26 = int_to_ptr.hbm [resolvable:$true] %s1887_s26 }
  0x15   : > { %1692 = vmatpush.msk.msra.mxu0 %vm690_vm0, %v300_v0  ;;  %1827 = vmatpush.msk.msra.mxu1 %vm690_vm0, %v300_v0  ;;  %s2014_s30 = scalar_lea.vmem %s2577_s0, %s1691_s27  ;;  %s1889_s27 = scalar_lea.hbm %s1888_s26, 1024 }
  0x16   : > { %v236_v1 = vld [vmem:[%s2014_s30 + $0x200] sm:$0xff]  ;;  %v237_v5 = vld [vmem:[%s2014_s30 + $0x208] sm:$0xff]  ;;  %v238_v9 = vld [vmem:[%s2014_s30 + $0x210] sm:$0xff]  ;;  %p1890_p11 = scmp.ne.s32.totalorder %s1888_s26, %s1889_s27  ;;  %p1894_p0 = scmp.lt.s32.totalorder %s1888_s26, %s2580_s3 }
  0x17   : > { %v268_v2 = vld [vmem:[%s2014_s30 + $0x300] sm:$0xff]  ;;  %1757 = vmatmul.msk.f32.vlgmr.msra.gmra.mxu2 %vm305_vm1, %v236_v1  ;;  %v269_v6 = vld [vmem:[%s2014_s30 + $0x308] sm:$0xff]  ;;  %v270_v10 = vld [vmem:[%s2014_s30 + $0x310] sm:$0xff] }
  0x18   : > { %v172_v3 = vld [vmem:[%s2014_s30] sm:$0xff]  ;;  %1789 = vmatmul.msk.f32.vlgmr.msra.gmra.mxu3 %vm305_vm1, %v268_v2  ;;  %v173_v7 = vld [vmem:[%s2014_s30 + $0x8] sm:$0xff]  ;;  %v174_v11 = vld [vmem:[%s2014_s30 + $0x10] sm:$0xff]  ;;  %p1891_p12 = pnand %p1890_p11, %p1997_p5 }
  0x19   : > { %v204_v4 = vld [vmem:[%s2014_s30 + $0x100] sm:$0xff]  ;;  %1693 = vmatmul.msk.f32.vlgmr.msra.gmra.mxu0 %vm305_vm1, %v172_v3  ;;  %v205_v8 = vld [vmem:[%s2014_s30 + $0x108] sm:$0xff]  ;;  %v206_v12 = vld [vmem:[%s2014_s30 + $0x110] sm:$0xff] }
  0x1a   : > { %1725 = vmatmul.msk.f32.vlgmr.msra.gmra.mxu1 %vm305_vm1, %v204_v4  ;;  %v239_v13 = vld [vmem:[%s2014_s30 + $0x218] sm:$0xff]  ;;  %v240_v17 = vld [vmem:[%s2014_s30 + $0x220] sm:$0xff]  ;;  %v241_v21 = vld [vmem:[%s2014_s30 + $0x228] sm:$0xff]  ;;  %p1892_p13 = pneg %p1891_p12 }
  0x1b   : > { %v271_v14 = vld [vmem:[%s2014_s30 + $0x318] sm:$0xff]  ;;  %v272_v18 = vld [vmem:[%s2014_s30 + $0x320] sm:$0xff]  ;;  %v273_v22 = vld [vmem:[%s2014_s30 + $0x328] sm:$0xff] }
  0x1c   : > { %v175_v15 = vld [vmem:[%s2014_s30 + $0x18] sm:$0xff]  ;;  %v176_v19 = vld [vmem:[%s2014_s30 + $0x20] sm:$0xff]  ;;  %v177_v23 = vld [vmem:[%s2014_s30 + $0x28] sm:$0xff] }
  0x1d   : > { %v207_v16 = vld [vmem:[%s2014_s30 + $0x118] sm:$0xff]  ;;  %v208_v20 = vld [vmem:[%s2014_s30 + $0x120] sm:$0xff]  ;;  %v209_v24 = vld [vmem:[%s2014_s30 + $0x128] sm:$0xff] }
  0x1e   : > { %v242_v25 = vld [vmem:[%s2014_s30 + $0x230] sm:$0xff]  ;;  %v243_v29 = vld [vmem:[%s2014_s30 + $0x238] sm:$0xff]  ;;  %v244_v33 = vld [vmem:[%s2014_s30 + $0x240] sm:$0xff] }
  0x1f   : > { %1758 = vmatmul.msk.f32.gmra.mxu2 %vm305_vm1, %v237_v5  ;;  %v274_v26 = vld [vmem:[%s2014_s30 + $0x330] sm:$0xff]  ;;  %v275_v30 = vld [vmem:[%s2014_s30 + $0x338] sm:$0xff]  ;;  %v276_v34 = vld [vmem:[%s2014_s30 + $0x340] sm:$0xff] }
  0x20   : > { %1790 = vmatmul.msk.f32.gmra.mxu3 %vm305_vm1, %v269_v6  ;;  %v178_v27 = vld [vmem:[%s2014_s30 + $0x30] sm:$0xff]  ;;  %v179_v31 = vld [vmem:[%s2014_s30 + $0x38] sm:$0xff]  ;;  %v180_v35 = vld [vmem:[%s2014_s30 + $0x40] sm:$0xff] }
  0x21   : > { %1694 = vmatmul.msk.f32.gmra.mxu0 %vm305_vm1, %v173_v7  ;;  %v210_v28 = vld [vmem:[%s2014_s30 + $0x130] sm:$0xff]  ;;  %v211_v32 = vld [vmem:[%s2014_s30 + $0x138] sm:$0xff]  ;;  %v212_v36 = vld [vmem:[%s2014_s30 + $0x140] sm:$0xff] }
  0x22   : > { %1726 = vmatmul.msk.f32.gmra.mxu1 %vm305_vm1, %v205_v8  ;;  %v245_v37 = vld [vmem:[%s2014_s30 + $0x248] sm:$0xff]  ;;  %v246_v41 = vld [vmem:[%s2014_s30 + $0x250] sm:$0xff]  ;;  %v247_v45 = vld [vmem:[%s2014_s30 + $0x258] sm:$0xff] }
  0x23   : > { %v277_v38 = vld [vmem:[%s2014_s30 + $0x348] sm:$0xff]  ;;  %v278_v42 = vld [vmem:[%s2014_s30 + $0x350] sm:$0xff]  ;;  %v279_v46 = vld [vmem:[%s2014_s30 + $0x358] sm:$0xff] }
  0x24   : > { %v181_v39 = vld [vmem:[%s2014_s30 + $0x48] sm:$0xff]  ;;  %v182_v43 = vld [vmem:[%s2014_s30 + $0x50] sm:$0xff]  ;;  %v183_v47 = vld [vmem:[%s2014_s30 + $0x58] sm:$0xff] }
  0x25   : > { %v213_v40 = vld [vmem:[%s2014_s30 + $0x148] sm:$0xff]  ;;  %v214_v44 = vld [vmem:[%s2014_s30 + $0x150] sm:$0xff]  ;;  %v215_v48 = vld [vmem:[%s2014_s30 + $0x158] sm:$0xff] }
  0x26   : > { %v248_v49 = vld [vmem:[%s2014_s30 + $0x260] sm:$0xff]  ;;  %v249_v53 = vld [vmem:[%s2014_s30 + $0x268] sm:$0xff]  ;;  %v250_v57 = vld [vmem:[%s2014_s30 + $0x270] sm:$0xff] }
  0x27   : > { %1759 = vmatmul.msk.f32.gmra.mxu2 %vm305_vm1, %v238_v9  ;;  %v280_v50 = vld [vmem:[%s2014_s30 + $0x360] sm:$0xff]  ;;  %v281_v54 = vld [vmem:[%s2014_s30 + $0x368] sm:$0xff]  ;;  %v282_v58 = vld [vmem:[%s2014_s30 + $0x370] sm:$0xff] }
  0x28   : > { %1791 = vmatmul.msk.f32.gmra.mxu3 %vm305_vm1, %v270_v10  ;;  %v184_v51 = vld [vmem:[%s2014_s30 + $0x60] sm:$0xff]  ;;  %v185_v55 = vld [vmem:[%s2014_s30 + $0x68] sm:$0xff]  ;;  %v186_v59 = vld [vmem:[%s2014_s30 + $0x70] sm:$0xff] }
  0x29   : > { %1695 = vmatmul.msk.f32.gmra.mxu0 %vm305_vm1, %v174_v11  ;;  %v216_v52 = vld [vmem:[%s2014_s30 + $0x160] sm:$0xff]  ;;  %v217_v56 = vld [vmem:[%s2014_s30 + $0x168] sm:$0xff]  ;;  %v218_v60 = vld [vmem:[%s2014_s30 + $0x170] sm:$0xff] }
  0x2a   : > { %1727 = vmatmul.msk.f32.gmra.mxu1 %vm305_vm1, %v206_v12  ;;  %v251_v61 = vld [vmem:[%s2014_s30 + $0x278] sm:$0xff]  ;;  %v2148_v1 = vld [vmem:[%s2579_s2] ss:$0 sm:$0xff] }
  0x2b   : > { %v283_v62 = vld [vmem:[%s2014_s30 + $0x378] sm:$0xff]  ;;  %v252_v2 = vld [vmem:[%s2014_s30 + $0x280] sm:$0xff] }
  0x2c   : > { %v187_v63 = vld [vmem:[%s2014_s30 + $0x78] sm:$0xff]  ;;  %v284_v3 = vld [vmem:[%s2014_s30 + $0x380] sm:$0xff] }
  0x2d   : > { %v219_v0 = vld [vmem:[%s2014_s30 + $0x178] sm:$0xff]  ;;  %v188_v6 = vld [vmem:[%s2014_s30 + $0x80] sm:$0xff] }
  0x2e   : > { %v220_v7 = vld [vmem:[%s2014_s30 + $0x180] sm:$0xff] }
  0x2f   : > { %1760 = vmatmul.msk.f32.gmra.mxu2 %vm305_vm1, %v239_v13 }
  0x30   : > { %1792 = vmatmul.msk.f32.gmra.mxu3 %vm305_vm1, %v271_v14 }
  0x31   : > { %1696 = vmatmul.msk.f32.gmra.mxu0 %vm305_vm1, %v175_v15 }
  0x32   : > { %1728 = vmatmul.msk.f32.gmra.mxu1 %vm305_vm1, %v207_v16 }
  0x37   : > { %1761 = vmatmul.msk.f32.gmra.mxu2 %vm305_vm1, %v240_v17 }
  0x38   : > { %1793 = vmatmul.msk.f32.gmra.mxu3 %vm305_vm1, %v272_v18  ;;  %v253_v18 = vld [vmem:[%s2014_s30 + $0x288] sm:$0xff] }
  0x39   : > { %1697 = vmatmul.msk.f32.gmra.mxu0 %vm305_vm1, %v176_v19  ;;  %v285_v19 = vld [vmem:[%s2014_s30 + $0x388] sm:$0xff] }
  0x3a   : > { %1729 = vmatmul.msk.f32.gmra.mxu1 %vm305_vm1, %v208_v20  ;;  %v189_v20 = vld [vmem:[%s2014_s30 + $0x88] sm:$0xff] }
  0x3f   : > { %1762 = vmatmul.msk.f32.gmra.mxu2 %vm305_vm1, %v241_v21  ;;  %v221_v21 = vld [vmem:[%s2014_s30 + $0x188] sm:$0xff] }
  0x40   : > { %1794 = vmatmul.msk.f32.gmra.mxu3 %vm305_vm1, %v273_v22 }
  0x41   : > { %1698 = vmatmul.msk.f32.gmra.mxu0 %vm305_vm1, %v177_v23 }
  0x42   : > { %1730 = vmatmul.msk.f32.gmra.mxu1 %vm305_vm1, %v209_v24 }
  0x47   : > { %1763 = vmatmul.msk.f32.gmra.mxu2 %vm305_vm1, %v242_v25 }
  0x48   : > { %1795 = vmatmul.msk.f32.gmra.mxu3 %vm305_vm1, %v274_v26 }
  0x49   : > { %1699 = vmatmul.msk.f32.gmra.mxu0 %vm305_vm1, %v178_v27 }
  0x4a   : > { %1731 = vmatmul.msk.f32.gmra.mxu1 %vm305_vm1, %v210_v28 }
  0x4f   : > { %1764 = vmatmul.msk.f32.gmra.mxu2 %vm305_vm1, %v243_v29 }
  0x50   : > { %1796 = vmatmul.msk.f32.gmra.mxu3 %vm305_vm1, %v275_v30 }
  0x51   : > { %1700 = vmatmul.msk.f32.gmra.mxu0 %vm305_vm1, %v179_v31 }
  0x52   : > { %1732 = vmatmul.msk.f32.gmra.mxu1 %vm305_vm1, %v211_v32 }
  0x57   : > { %1765 = vmatmul.msk.f32.gmra.mxu2 %vm305_vm1, %v244_v33 }
  0x58   : > { %1797 = vmatmul.msk.f32.gmra.mxu3 %vm305_vm1, %v276_v34 }
  0x59   : > { %1701 = vmatmul.msk.f32.gmra.mxu0 %vm305_vm1, %v180_v35 }
  0x5a   : > { %1733 = vmatmul.msk.f32.gmra.mxu1 %vm305_vm1, %v212_v36 }
  0x5f   : > { %1766 = vmatmul.msk.f32.gmra.mxu2 %vm305_vm1, %v245_v37 }
  0x60   : > { %1798 = vmatmul.msk.f32.gmra.mxu3 %vm305_vm1, %v277_v38  ;;  %v254_v38 = vld [vmem:[%s2014_s30 + $0x290] sm:$0xff] }
  0x61   : > { %1702 = vmatmul.msk.f32.gmra.mxu0 %vm305_vm1, %v181_v39  ;;  %v286_v39 = vld [vmem:[%s2014_s30 + $0x390] sm:$0xff] }
  0x62   : > { %1734 = vmatmul.msk.f32.gmra.mxu1 %vm305_vm1, %v213_v40  ;;  %v190_v40 = vld [vmem:[%s2014_s30 + $0x90] sm:$0xff] }
  0x67   : > { %1767 = vmatmul.msk.f32.gmra.mxu2 %vm305_vm1, %v246_v41  ;;  %v222_v41 = vld [vmem:[%s2014_s30 + $0x190] sm:$0xff] }
  0x68   : > { %1799 = vmatmul.msk.f32.gmra.mxu3 %vm305_vm1, %v278_v42 }
  0x69   : > { %1703 = vmatmul.msk.f32.gmra.mxu0 %vm305_vm1, %v182_v43 }
  0x6a   : > { %1735 = vmatmul.msk.f32.gmra.mxu1 %vm305_vm1, %v214_v44 }
  0x6f   : > { %1768 = vmatmul.msk.f32.gmra.mxu2 %vm305_vm1, %v247_v45 }
  0x70   : > { %1800 = vmatmul.msk.f32.gmra.mxu3 %vm305_vm1, %v279_v46 }
  0x71   : > { %1704 = vmatmul.msk.f32.gmra.mxu0 %vm305_vm1, %v183_v47 }
  0x72   : > { %1736 = vmatmul.msk.f32.gmra.mxu1 %vm305_vm1, %v215_v48 }
  0x77   : > { %1769 = vmatmul.msk.f32.gmra.mxu2 %vm305_vm1, %v248_v49 }
  0x78   : > { %1801 = vmatmul.msk.f32.gmra.mxu3 %vm305_vm1, %v280_v50 }
  0x79   : > { %1705 = vmatmul.msk.f32.gmra.mxu0 %vm305_vm1, %v184_v51 }
  0x7a   : > { %1737 = vmatmul.msk.f32.gmra.mxu1 %vm305_vm1, %v216_v52 }
  0x7f   : > { %1770 = vmatmul.msk.f32.gmra.mxu2 %vm305_vm1, %v249_v53 }
  0x80   : > { %1802 = vmatmul.msk.f32.gmra.mxu3 %vm305_vm1, %v281_v54 }
  0x81   : > { %1706 = vmatmul.msk.f32.gmra.mxu0 %vm305_vm1, %v185_v55 }
  0x82   : > { %1738 = vmatmul.msk.f32.gmra.mxu1 %vm305_vm1, %v217_v56 }
  0x87   : > { %1771 = vmatmul.msk.f32.gmra.mxu2 %vm305_vm1, %v250_v57 }
  0x88   : > { %1803 = vmatmul.msk.f32.gmra.mxu3 %vm305_vm1, %v282_v58  ;;  %v255_v58 = vld [vmem:[%s2014_s30 + $0x298] sm:$0xff] }
  0x89   : > { %1707 = vmatmul.msk.f32.gmra.mxu0 %vm305_vm1, %v186_v59  ;;  %v287_v59 = vld [vmem:[%s2014_s30 + $0x398] sm:$0xff] }
  0x8a   : > { %1739 = vmatmul.msk.f32.gmra.mxu1 %vm305_vm1, %v218_v60  ;;  %v191_v60 = vld [vmem:[%s2014_s30 + $0x98] sm:$0xff] }
  0x8f   : > { %1772 = vmatmul.msk.f32.gmra.mxu2 %vm305_vm1, %v251_v61  ;;  %v223_v61 = vld [vmem:[%s2014_s30 + $0x198] sm:$0xff] }
  0x90   : > { %1804 = vmatmul.msk.f32.gmra.mxu3 %vm305_vm1, %v283_v62 }
  0x91   : > { %1708 = vmatmul.msk.f32.gmra.mxu0 %vm305_vm1, %v187_v63 }
  0x92   : > { %1740 = vmatmul.msk.f32.gmra.mxu1 %vm305_vm1, %v219_v0 }
  0x96   : > { %v711_v4 = vpop.f32.mrf.mxu0 }
  0x97   : > { %v807_v5 = vpop.f32.mrf.mxu1  ;;  %v712_v8 = vadd.f32 %v2148_v1, %v711_v4  ;;  %1773 = vmatmul.msk.f32.gmra.mxu2 %vm305_vm1, %v252_v2 }
  0x98   : > { %v808_v9 = vadd.f32 %v2148_v1, %v807_v5  ;;  %1805 = vmatmul.msk.f32.gmra.mxu3 %vm305_vm1, %v284_v3 }
  0x99   : > { %vm1095_vm2 = vcmp.gt.f32.partialorder %v712_v8, 0.0  ;;  %v1223_v10 = vmul.f32 0.2, %v712_v8  ;;  %1709 = vmatmul.msk.f32.gmra.mxu0 %vm305_vm1, %v188_v6 }
  0x9a   : > { %vm1127_vm3 = vcmp.gt.f32.partialorder %v808_v9, 0.0  ;;  %v1255_v11 = vmul.f32 0.2, %v808_v9  ;;  %1741 = vmatmul.msk.f32.gmra.mxu1 %vm305_vm1, %v220_v7  ;;  %v903_v14 = vpop.f32.mrf.mxu2 }
  0x9b   : > { %v1351_v12 = vsel %vm1095_vm2, %v712_v8, %v1223_v10  ;;  %v999_v15 = vpop.f32.mrf.mxu3  ;;  %v904_v16 = vadd.f32 %v2148_v1, %v903_v14 }
  0x9c   : > { %v1383_v13 = vsel %vm1127_vm3, %v808_v9, %v1255_v11  ;;  %1479 = vst [vmem:[%s2162_s8] sm:$0xff] %v1351_v12  ;;  %v1000_v17 = vadd.f32 %v2148_v1, %v999_v15  ;;  %v256_v15 = vld [vmem:[%s2014_s30 + $0x2a0] sm:$0xff] }
  0x9d   : > { %1511 = vst [vmem:[%s2162_s8 + $0x100] sm:$0xff] %v1383_v13  ;;  %vm1159_vm4 = vcmp.gt.f32.partialorder %v904_v16, 0.0  ;;  %v1287_v22 = vmul.f32 0.2, %v904_v16 }
  0x9e   : > { %vm1191_vm5 = vcmp.gt.f32.partialorder %v1000_v17, 0.0  ;;  %v1319_v23 = vmul.f32 0.2, %v1000_v17  ;;  %v714_v24 = vpop.f32.mrf.mxu0 }
  0x9f   : > { %v810_v25 = vpop.f32.mrf.mxu1  ;;  %v715_v26 = vadd.f32 %v2148_v1, %v714_v24  ;;  %v1415_v28 = vsel %vm1159_vm4, %v904_v16, %v1287_v22  ;;  %1774 = vmatmul.msk.f32.gmra.mxu2 %vm305_vm1, %v253_v18  ;;  %v288_v16 = vld [vmem:[%s2014_s30 + $0x3a0] sm:$0xff] }
  0xa0   : > { %v811_v27 = vadd.f32 %v2148_v1, %v810_v25  ;;  %v1447_v29 = vsel %vm1191_vm5, %v1000_v17, %v1319_v23  ;;  %1806 = vmatmul.msk.f32.gmra.mxu3 %vm305_vm1, %v285_v19  ;;  %1543 = vst [vmem:[%s2162_s8 + $0x200] sm:$0xff] %v1415_v28  ;;  %v192_v17 = vld [vmem:[%s2014_s30 + $0xa0] sm:$0xff] }
  0xa1   : > { %vm1096_vm6 = vcmp.gt.f32.partialorder %v715_v26, 0.0  ;;  %v1224_v30 = vmul.f32 0.2, %v715_v26  ;;  %1710 = vmatmul.msk.f32.gmra.mxu0 %vm305_vm1, %v189_v20  ;;  %1575 = vst [vmem:[%s2162_s8 + $0x300] sm:$0xff] %v1447_v29  ;;  %v224_v18 = vld [vmem:[%s2014_s30 + $0x1a0] sm:$0xff] }
  0xa2   : > { %vm1128_vm7 = vcmp.gt.f32.partialorder %v811_v27, 0.0  ;;  %1742 = vmatmul.msk.f32.gmra.mxu1 %vm305_vm1, %v221_v21  ;;  %v1256_v31 = vmul.f32 0.2, %v811_v27  ;;  %v906_v33 = vpop.f32.mrf.mxu2 }
  0xa3   : > { %v1352_v32 = vsel %vm1096_vm6, %v715_v26, %v1224_v30  ;;  %v1002_v34 = vpop.f32.mrf.mxu3  ;;  %v907_v36 = vadd.f32 %v2148_v1, %v906_v33 }
  0xa4   : > { %1480 = vst [vmem:[%s2162_s8 + $0x8] sm:$0xff] %v1352_v32  ;;  %v1384_v35 = vsel %vm1128_vm7, %v811_v27, %v1256_v31  ;;  %v1003_v37 = vadd.f32 %v2148_v1, %v1002_v34 }
  0xa5   : > { %1512 = vst [vmem:[%s2162_s8 + $0x108] sm:$0xff] %v1384_v35  ;;  %vm1160_vm8 = vcmp.gt.f32.partialorder %v907_v36, 0.0  ;;  %v1288_v42 = vmul.f32 0.2, %v907_v36  ;;  %v257_v35 = vld [vmem:[%s2014_s30 + $0x2a8] sm:$0xff] }
  0xa6   : > { %vm1192_vm9 = vcmp.gt.f32.partialorder %v1003_v37, 0.0  ;;  %v1320_v43 = vmul.f32 0.2, %v1003_v37  ;;  %v717_v44 = vpop.f32.mrf.mxu0 }
  0xa7   : > { %v813_v45 = vpop.f32.mrf.mxu1  ;;  %v718_v46 = vadd.f32 %v2148_v1, %v717_v44  ;;  %v1416_v48 = vsel %vm1160_vm8, %v907_v36, %v1288_v42  ;;  %1775 = vmatmul.msk.f32.gmra.mxu2 %vm305_vm1, %v254_v38  ;;  %v289_v36 = vld [vmem:[%s2014_s30 + $0x3a8] sm:$0xff] }
  0xa8   : > { %v814_v47 = vadd.f32 %v2148_v1, %v813_v45  ;;  %v1448_v49 = vsel %vm1192_vm9, %v1003_v37, %v1320_v43  ;;  %1807 = vmatmul.msk.f32.gmra.mxu3 %vm305_vm1, %v286_v39  ;;  %1544 = vst [vmem:[%s2162_s8 + $0x208] sm:$0xff] %v1416_v48  ;;  %v193_v37 = vld [vmem:[%s2014_s30 + $0xa8] sm:$0xff] }
  0xa9   : > { %vm1097_vm10 = vcmp.gt.f32.partialorder %v718_v46, 0.0  ;;  %v1225_v50 = vmul.f32 0.2, %v718_v46  ;;  %1711 = vmatmul.msk.f32.gmra.mxu0 %vm305_vm1, %v190_v40  ;;  %1576 = vst [vmem:[%s2162_s8 + $0x308] sm:$0xff] %v1448_v49  ;;  %v225_v38 = vld [vmem:[%s2014_s30 + $0x1a8] sm:$0xff] }
  0xaa   : > { %vm1129_vm11 = vcmp.gt.f32.partialorder %v814_v47, 0.0  ;;  %1743 = vmatmul.msk.f32.gmra.mxu1 %vm305_vm1, %v222_v41  ;;  %v1257_v51 = vmul.f32 0.2, %v814_v47  ;;  %v909_v53 = vpop.f32.mrf.mxu2 }
  0xab   : > { %v1353_v52 = vsel %vm1097_vm10, %v718_v46, %v1225_v50  ;;  %v1005_v54 = vpop.f32.mrf.mxu3  ;;  %v910_v56 = vadd.f32 %v2148_v1, %v909_v53 }
  0xac   : > { %1481 = vst [vmem:[%s2162_s8 + $0x10] sm:$0xff] %v1353_v52  ;;  %v1385_v55 = vsel %vm1129_vm11, %v814_v47, %v1257_v51  ;;  %v1006_v57 = vadd.f32 %v2148_v1, %v1005_v54 }
  0xad   : > { %1513 = vst [vmem:[%s2162_s8 + $0x110] sm:$0xff] %v1385_v55  ;;  %vm1161_vm12 = vcmp.gt.f32.partialorder %v910_v56, 0.0  ;;  %v1289_v62 = vmul.f32 0.2, %v910_v56  ;;  %v258_v55 = vld [vmem:[%s2014_s30 + $0x2b0] sm:$0xff] }
  0xae   : > { %vm1193_vm13 = vcmp.gt.f32.partialorder %v1006_v57, 0.0  ;;  %v1321_v63 = vmul.f32 0.2, %v1006_v57  ;;  %v720_v0 = vpop.f32.mrf.mxu0 }
  0xaf   : > { %v816_v2 = vpop.f32.mrf.mxu1  ;;  %v721_v3 = vadd.f32 %v2148_v1, %v720_v0  ;;  %v1417_v5 = vsel %vm1161_vm12, %v910_v56, %v1289_v62  ;;  %1776 = vmatmul.msk.f32.gmra.mxu2 %vm305_vm1, %v255_v58  ;;  %v290_v56 = vld [vmem:[%s2014_s30 + $0x3b0] sm:$0xff] }
  0xb0   : > { %v817_v4 = vadd.f32 %v2148_v1, %v816_v2  ;;  %v1449_v6 = vsel %vm1193_vm13, %v1006_v57, %v1321_v63  ;;  %1808 = vmatmul.msk.f32.gmra.mxu3 %vm305_vm1, %v287_v59  ;;  %1545 = vst [vmem:[%s2162_s8 + $0x210] sm:$0xff] %v1417_v5  ;;  %v194_v57 = vld [vmem:[%s2014_s30 + $0xb0] sm:$0xff] }
  0xb1   : > { %vm1098_vm14 = vcmp.gt.f32.partialorder %v721_v3, 0.0  ;;  %v1226_v7 = vmul.f32 0.2, %v721_v3  ;;  %1712 = vmatmul.msk.f32.gmra.mxu0 %vm305_vm1, %v191_v60  ;;  %1577 = vst [vmem:[%s2162_s8 + $0x310] sm:$0xff] %v1449_v6  ;;  %v226_v58 = vld [vmem:[%s2014_s30 + $0x1b0] sm:$0xff] }
  0xb2   : > { %vm1130_vm15 = vcmp.gt.f32.partialorder %v817_v4, 0.0  ;;  %1744 = vmatmul.msk.f32.gmra.mxu1 %vm305_vm1, %v223_v61  ;;  %v1258_v8 = vmul.f32 0.2, %v817_v4  ;;  %v912_v10 = vpop.f32.mrf.mxu2 }
  0xb3   : > { %v1354_v9 = vsel %vm1098_vm14, %v721_v3, %v1226_v7  ;;  %v1008_v11 = vpop.f32.mrf.mxu3  ;;  %v913_v13 = vadd.f32 %v2148_v1, %v912_v10 }
  0xb4   : > { %1482 = vst [vmem:[%s2162_s8 + $0x18] sm:$0xff] %v1354_v9  ;;  %v1386_v12 = vsel %vm1130_vm15, %v817_v4, %v1258_v8  ;;  %v1009_v14 = vadd.f32 %v2148_v1, %v1008_v11 }
  0xb5   : > { %1514 = vst [vmem:[%s2162_s8 + $0x118] sm:$0xff] %v1386_v12  ;;  %vm1162_vm0 = vcmp.gt.f32.partialorder %v913_v13, 0.0  ;;  %v1290_v19 = vmul.f32 0.2, %v913_v13  ;;  %v259_v12 = vld [vmem:[%s2014_s30 + $0x2b8] sm:$0xff] }
  0xb6   : > { %vm1194_vm2 = vcmp.gt.f32.partialorder %v1009_v14, 0.0  ;;  %v1322_v20 = vmul.f32 0.2, %v1009_v14  ;;  %v723_v21 = vpop.f32.mrf.mxu0 }
  0xb7   : > { %v819_v22 = vpop.f32.mrf.mxu1  ;;  %v724_v23 = vadd.f32 %v2148_v1, %v723_v21  ;;  %v1418_v25 = vsel %vm1162_vm0, %v913_v13, %v1290_v19  ;;  %1777 = vmatmul.msk.f32.gmra.mxu2 %vm305_vm1, %v256_v15  ;;  %v291_v13 = vld [vmem:[%s2014_s30 + $0x3b8] sm:$0xff] }
  0xb8   : > { %v820_v24 = vadd.f32 %v2148_v1, %v819_v22  ;;  %v1450_v26 = vsel %vm1194_vm2, %v1009_v14, %v1322_v20  ;;  %1809 = vmatmul.msk.f32.gmra.mxu3 %vm305_vm1, %v288_v16  ;;  %1546 = vst [vmem:[%s2162_s8 + $0x218] sm:$0xff] %v1418_v25  ;;  %v195_v14 = vld [vmem:[%s2014_s30 + $0xb8] sm:$0xff] }
  0xb9   : > { %vm1099_vm3 = vcmp.gt.f32.partialorder %v724_v23, 0.0  ;;  %v1227_v27 = vmul.f32 0.2, %v724_v23  ;;  %1713 = vmatmul.msk.f32.gmra.mxu0 %vm305_vm1, %v192_v17  ;;  %1578 = vst [vmem:[%s2162_s8 + $0x318] sm:$0xff] %v1450_v26  ;;  %v227_v15 = vld [vmem:[%s2014_s30 + $0x1b8] sm:$0xff] }
  0xba   : > { %vm1131_vm4 = vcmp.gt.f32.partialorder %v820_v24, 0.0  ;;  %1745 = vmatmul.msk.f32.gmra.mxu1 %vm305_vm1, %v224_v18  ;;  %v1259_v28 = vmul.f32 0.2, %v820_v24  ;;  %v915_v30 = vpop.f32.mrf.mxu2 }
  0xbb   : > { %v1355_v29 = vsel %vm1099_vm3, %v724_v23, %v1227_v27  ;;  %v1011_v31 = vpop.f32.mrf.mxu3  ;;  %v916_v33 = vadd.f32 %v2148_v1, %v915_v30 }
  0xbc   : > { %1483 = vst [vmem:[%s2162_s8 + $0x20] sm:$0xff] %v1355_v29  ;;  %v1387_v32 = vsel %vm1131_vm4, %v820_v24, %v1259_v28  ;;  %v1012_v34 = vadd.f32 %v2148_v1, %v1011_v31 }
  0xbd   : > { %1515 = vst [vmem:[%s2162_s8 + $0x120] sm:$0xff] %v1387_v32  ;;  %vm1163_vm5 = vcmp.gt.f32.partialorder %v916_v33, 0.0  ;;  %v1291_v39 = vmul.f32 0.2, %v916_v33  ;;  %v260_v32 = vld [vmem:[%s2014_s30 + $0x2c0] sm:$0xff] }
  0xbe   : > { %vm1195_vm6 = vcmp.gt.f32.partialorder %v1012_v34, 0.0  ;;  %v1323_v40 = vmul.f32 0.2, %v1012_v34  ;;  %v726_v41 = vpop.f32.mrf.mxu0 }
  0xbf   : > { %v822_v42 = vpop.f32.mrf.mxu1  ;;  %v727_v43 = vadd.f32 %v2148_v1, %v726_v41  ;;  %v1419_v45 = vsel %vm1163_vm5, %v916_v33, %v1291_v39  ;;  %1778 = vmatmul.msk.f32.gmra.mxu2 %vm305_vm1, %v257_v35  ;;  %v292_v33 = vld [vmem:[%s2014_s30 + $0x3c0] sm:$0xff] }
  0xc0   : > { %v823_v44 = vadd.f32 %v2148_v1, %v822_v42  ;;  %v1451_v46 = vsel %vm1195_vm6, %v1012_v34, %v1323_v40  ;;  %1810 = vmatmul.msk.f32.gmra.mxu3 %vm305_vm1, %v289_v36  ;;  %1547 = vst [vmem:[%s2162_s8 + $0x220] sm:$0xff] %v1419_v45  ;;  %v196_v34 = vld [vmem:[%s2014_s30 + $0xc0] sm:$0xff] }
  0xc1   : > { %vm1100_vm7 = vcmp.gt.f32.partialorder %v727_v43, 0.0  ;;  %v1228_v47 = vmul.f32 0.2, %v727_v43  ;;  %1714 = vmatmul.msk.f32.gmra.mxu0 %vm305_vm1, %v193_v37  ;;  %1579 = vst [vmem:[%s2162_s8 + $0x320] sm:$0xff] %v1451_v46  ;;  %v228_v35 = vld [vmem:[%s2014_s30 + $0x1c0] sm:$0xff] }
  0xc2   : > { %vm1132_vm8 = vcmp.gt.f32.partialorder %v823_v44, 0.0  ;;  %1746 = vmatmul.msk.f32.gmra.mxu1 %vm305_vm1, %v225_v38  ;;  %v1260_v48 = vmul.f32 0.2, %v823_v44  ;;  %v918_v50 = vpop.f32.mrf.mxu2 }
  0xc3   : > { %v1356_v49 = vsel %vm1100_vm7, %v727_v43, %v1228_v47  ;;  %v1014_v51 = vpop.f32.mrf.mxu3  ;;  %v919_v53 = vadd.f32 %v2148_v1, %v918_v50 }
  0xc4   : > { %1484 = vst [vmem:[%s2162_s8 + $0x28] sm:$0xff] %v1356_v49  ;;  %v1388_v52 = vsel %vm1132_vm8, %v823_v44, %v1260_v48  ;;  %v1015_v54 = vadd.f32 %v2148_v1, %v1014_v51 }
  0xc5   : > { %1516 = vst [vmem:[%s2162_s8 + $0x128] sm:$0xff] %v1388_v52  ;;  %vm1164_vm9 = vcmp.gt.f32.partialorder %v919_v53, 0.0  ;;  %v1292_v59 = vmul.f32 0.2, %v919_v53  ;;  %v261_v52 = vld [vmem:[%s2014_s30 + $0x2c8] sm:$0xff] }
  0xc6   : > { %vm1196_vm10 = vcmp.gt.f32.partialorder %v1015_v54, 0.0  ;;  %v1324_v60 = vmul.f32 0.2, %v1015_v54  ;;  %v729_v61 = vpop.f32.mrf.mxu0 }
  0xc7   : > { %v825_v62 = vpop.f32.mrf.mxu1  ;;  %v730_v63 = vadd.f32 %v2148_v1, %v729_v61  ;;  %v1420_v2 = vsel %vm1164_vm9, %v919_v53, %v1292_v59  ;;  %1779 = vmatmul.msk.f32.gmra.mxu2 %vm305_vm1, %v258_v55  ;;  %v293_v53 = vld [vmem:[%s2014_s30 + $0x3c8] sm:$0xff] }
  0xc8   : > { %v826_v0 = vadd.f32 %v2148_v1, %v825_v62  ;;  %v1452_v3 = vsel %vm1196_vm10, %v1015_v54, %v1324_v60  ;;  %1811 = vmatmul.msk.f32.gmra.mxu3 %vm305_vm1, %v290_v56  ;;  %1548 = vst [vmem:[%s2162_s8 + $0x228] sm:$0xff] %v1420_v2  ;;  %v197_v54 = vld [vmem:[%s2014_s30 + $0xc8] sm:$0xff] }
  0xc9   : > { %vm1101_vm11 = vcmp.gt.f32.partialorder %v730_v63, 0.0  ;;  %v1229_v4 = vmul.f32 0.2, %v730_v63  ;;  %1715 = vmatmul.msk.f32.gmra.mxu0 %vm305_vm1, %v194_v57  ;;  %1580 = vst [vmem:[%s2162_s8 + $0x328] sm:$0xff] %v1452_v3  ;;  %v229_v55 = vld [vmem:[%s2014_s30 + $0x1c8] sm:$0xff] }
  0xca   : > { %vm1133_vm12 = vcmp.gt.f32.partialorder %v826_v0, 0.0  ;;  %1747 = vmatmul.msk.f32.gmra.mxu1 %vm305_vm1, %v226_v58  ;;  %v1261_v5 = vmul.f32 0.2, %v826_v0  ;;  %v921_v7 = vpop.f32.mrf.mxu2 }
  0xcb   : > { %v1357_v6 = vsel %vm1101_vm11, %v730_v63, %v1229_v4  ;;  %v1017_v8 = vpop.f32.mrf.mxu3  ;;  %v922_v10 = vadd.f32 %v2148_v1, %v921_v7 }
  0xcc   : > { %1485 = vst [vmem:[%s2162_s8 + $0x30] sm:$0xff] %v1357_v6  ;;  %v1389_v9 = vsel %vm1133_vm12, %v826_v0, %v1261_v5  ;;  %v1018_v11 = vadd.f32 %v2148_v1, %v1017_v8 }
  0xcd   : > { %1517 = vst [vmem:[%s2162_s8 + $0x130] sm:$0xff] %v1389_v9  ;;  %vm1165_vm13 = vcmp.gt.f32.partialorder %v922_v10, 0.0  ;;  %v1293_v16 = vmul.f32 0.2, %v922_v10  ;;  %v262_v9 = vld [vmem:[%s2014_s30 + $0x2d0] sm:$0xff] }
  0xce   : > { %vm1197_vm14 = vcmp.gt.f32.partialorder %v1018_v11, 0.0  ;;  %v1325_v17 = vmul.f32 0.2, %v1018_v11  ;;  %v732_v18 = vpop.f32.mrf.mxu0 }
  0xcf   : > { %v828_v19 = vpop.f32.mrf.mxu1  ;;  %v733_v20 = vadd.f32 %v2148_v1, %v732_v18  ;;  %v1421_v22 = vsel %vm1165_vm13, %v922_v10, %v1293_v16  ;;  %1780 = vmatmul.msk.f32.gmra.mxu2 %vm305_vm1, %v259_v12  ;;  %v294_v10 = vld [vmem:[%s2014_s30 + $0x3d0] sm:$0xff] }
  0xd0   : > { %v829_v21 = vadd.f32 %v2148_v1, %v828_v19  ;;  %v1453_v23 = vsel %vm1197_vm14, %v1018_v11, %v1325_v17  ;;  %1812 = vmatmul.msk.f32.gmra.mxu3 %vm305_vm1, %v291_v13  ;;  %1549 = vst [vmem:[%s2162_s8 + $0x230] sm:$0xff] %v1421_v22  ;;  %v198_v11 = vld [vmem:[%s2014_s30 + $0xd0] sm:$0xff] }
  0xd1   : > { %vm1102_vm15 = vcmp.gt.f32.partialorder %v733_v20, 0.0  ;;  %v1230_v24 = vmul.f32 0.2, %v733_v20  ;;  %1716 = vmatmul.msk.f32.gmra.mxu0 %vm305_vm1, %v195_v14  ;;  %1581 = vst [vmem:[%s2162_s8 + $0x330] sm:$0xff] %v1453_v23  ;;  %v230_v12 = vld [vmem:[%s2014_s30 + $0x1d0] sm:$0xff] }
  0xd2   : > { %vm1134_vm0 = vcmp.gt.f32.partialorder %v829_v21, 0.0  ;;  %1748 = vmatmul.msk.f32.gmra.mxu1 %vm305_vm1, %v227_v15  ;;  %v1262_v25 = vmul.f32 0.2, %v829_v21  ;;  %v924_v27 = vpop.f32.mrf.mxu2 }
  0xd3   : > { %v1358_v26 = vsel %vm1102_vm15, %v733_v20, %v1230_v24  ;;  %v1020_v28 = vpop.f32.mrf.mxu3  ;;  %v925_v30 = vadd.f32 %v2148_v1, %v924_v27 }
  0xd4   : > { %1486 = vst [vmem:[%s2162_s8 + $0x38] sm:$0xff] %v1358_v26  ;;  %v1390_v29 = vsel %vm1134_vm0, %v829_v21, %v1262_v25  ;;  %v1021_v31 = vadd.f32 %v2148_v1, %v1020_v28 }
  0xd5   : > { %1518 = vst [vmem:[%s2162_s8 + $0x138] sm:$0xff] %v1390_v29  ;;  %vm1166_vm2 = vcmp.gt.f32.partialorder %v925_v30, 0.0  ;;  %v1294_v36 = vmul.f32 0.2, %v925_v30  ;;  %v263_v29 = vld [vmem:[%s2014_s30 + $0x2d8] sm:$0xff] }
  0xd6   : > { %vm1198_vm3 = vcmp.gt.f32.partialorder %v1021_v31, 0.0  ;;  %v1326_v37 = vmul.f32 0.2, %v1021_v31  ;;  %v735_v38 = vpop.f32.mrf.mxu0 }
  0xd7   : > { %v831_v39 = vpop.f32.mrf.mxu1  ;;  %v736_v40 = vadd.f32 %v2148_v1, %v735_v38  ;;  %v1422_v42 = vsel %vm1166_vm2, %v925_v30, %v1294_v36  ;;  %1781 = vmatmul.msk.f32.gmra.mxu2 %vm305_vm1, %v260_v32  ;;  %v295_v30 = vld [vmem:[%s2014_s30 + $0x3d8] sm:$0xff] }
  0xd8   : > { %v832_v41 = vadd.f32 %v2148_v1, %v831_v39  ;;  %v1454_v43 = vsel %vm1198_vm3, %v1021_v31, %v1326_v37  ;;  %1813 = vmatmul.msk.f32.gmra.mxu3 %vm305_vm1, %v292_v33  ;;  %1550 = vst [vmem:[%s2162_s8 + $0x238] sm:$0xff] %v1422_v42  ;;  %v199_v31 = vld [vmem:[%s2014_s30 + $0xd8] sm:$0xff] }
  0xd9   : > { %vm1103_vm4 = vcmp.gt.f32.partialorder %v736_v40, 0.0  ;;  %v1231_v44 = vmul.f32 0.2, %v736_v40  ;;  %1717 = vmatmul.msk.f32.gmra.mxu0 %vm305_vm1, %v196_v34  ;;  %1582 = vst [vmem:[%s2162_s8 + $0x338] sm:$0xff] %v1454_v43  ;;  %v231_v32 = vld [vmem:[%s2014_s30 + $0x1d8] sm:$0xff] }
  0xda   : > { %vm1135_vm5 = vcmp.gt.f32.partialorder %v832_v41, 0.0  ;;  %1749 = vmatmul.msk.f32.gmra.mxu1 %vm305_vm1, %v228_v35  ;;  %v1263_v45 = vmul.f32 0.2, %v832_v41  ;;  %v927_v47 = vpop.f32.mrf.mxu2 }
  0xdb   : > { %v1359_v46 = vsel %vm1103_vm4, %v736_v40, %v1231_v44  ;;  %v1023_v48 = vpop.f32.mrf.mxu3  ;;  %v928_v50 = vadd.f32 %v2148_v1, %v927_v47 }
  0xdc   : > { %1487 = vst [vmem:[%s2162_s8 + $0x40] sm:$0xff] %v1359_v46  ;;  %v1391_v49 = vsel %vm1135_vm5, %v832_v41, %v1263_v45  ;;  %v1024_v51 = vadd.f32 %v2148_v1, %v1023_v48 }
  0xdd   : > { %1519 = vst [vmem:[%s2162_s8 + $0x140] sm:$0xff] %v1391_v49  ;;  %vm1167_vm6 = vcmp.gt.f32.partialorder %v928_v50, 0.0  ;;  %v1295_v56 = vmul.f32 0.2, %v928_v50  ;;  %v264_v49 = vld [vmem:[%s2014_s30 + $0x2e0] sm:$0xff] }
  0xde   : > { %vm1199_vm7 = vcmp.gt.f32.partialorder %v1024_v51, 0.0  ;;  %v1327_v57 = vmul.f32 0.2, %v1024_v51  ;;  %v738_v58 = vpop.f32.mrf.mxu0 }
  0xdf   : > { %v834_v59 = vpop.f32.mrf.mxu1  ;;  %v739_v60 = vadd.f32 %v2148_v1, %v738_v58  ;;  %v1423_v62 = vsel %vm1167_vm6, %v928_v50, %v1295_v56  ;;  %1782 = vmatmul.msk.f32.gmra.mxu2 %vm305_vm1, %v261_v52  ;;  %v296_v50 = vld [vmem:[%s2014_s30 + $0x3e0] sm:$0xff] }
  0xe0   : > { %v835_v61 = vadd.f32 %v2148_v1, %v834_v59  ;;  %v1455_v63 = vsel %vm1199_vm7, %v1024_v51, %v1327_v57  ;;  %1814 = vmatmul.msk.f32.gmra.mxu3 %vm305_vm1, %v293_v53  ;;  %1551 = vst [vmem:[%s2162_s8 + $0x240] sm:$0xff] %v1423_v62  ;;  %v200_v51 = vld [vmem:[%s2014_s30 + $0xe0] sm:$0xff] }
  0xe1   : > { %vm1104_vm8 = vcmp.gt.f32.partialorder %v739_v60, 0.0  ;;  %v1232_v0 = vmul.f32 0.2, %v739_v60  ;;  %1718 = vmatmul.msk.f32.gmra.mxu0 %vm305_vm1, %v197_v54  ;;  %1583 = vst [vmem:[%s2162_s8 + $0x340] sm:$0xff] %v1455_v63  ;;  %v232_v52 = vld [vmem:[%s2014_s30 + $0x1e0] sm:$0xff] }
  0xe2   : > { %vm1136_vm9 = vcmp.gt.f32.partialorder %v835_v61, 0.0  ;;  %1750 = vmatmul.msk.f32.gmra.mxu1 %vm305_vm1, %v229_v55  ;;  %v1264_v2 = vmul.f32 0.2, %v835_v61  ;;  %v930_v4 = vpop.f32.mrf.mxu2 }
  0xe3   : > { %v1360_v3 = vsel %vm1104_vm8, %v739_v60, %v1232_v0  ;;  %v1026_v5 = vpop.f32.mrf.mxu3  ;;  %v931_v7 = vadd.f32 %v2148_v1, %v930_v4 }
  0xe4   : > { %1488 = vst [vmem:[%s2162_s8 + $0x48] sm:$0xff] %v1360_v3  ;;  %v1392_v6 = vsel %vm1136_vm9, %v835_v61, %v1264_v2  ;;  %v1027_v8 = vadd.f32 %v2148_v1, %v1026_v5 }
  0xe5   : > { %1520 = vst [vmem:[%s2162_s8 + $0x148] sm:$0xff] %v1392_v6  ;;  %vm1168_vm10 = vcmp.gt.f32.partialorder %v931_v7, 0.0  ;;  %v1296_v13 = vmul.f32 0.2, %v931_v7  ;;  %v265_v6 = vld [vmem:[%s2014_s30 + $0x2e8] sm:$0xff] }
  0xe6   : > { %vm1200_vm11 = vcmp.gt.f32.partialorder %v1027_v8, 0.0  ;;  %v1328_v14 = vmul.f32 0.2, %v1027_v8  ;;  %v741_v15 = vpop.f32.mrf.mxu0 }
  0xe7   : > { %v837_v16 = vpop.f32.mrf.mxu1  ;;  %v742_v17 = vadd.f32 %v2148_v1, %v741_v15  ;;  %v1424_v19 = vsel %vm1168_vm10, %v931_v7, %v1296_v13  ;;  %1783 = vmatmul.msk.f32.gmra.mxu2 %vm305_vm1, %v262_v9  ;;  %v297_v7 = vld [vmem:[%s2014_s30 + $0x3e8] sm:$0xff] }
  0xe8   : > { %v838_v18 = vadd.f32 %v2148_v1, %v837_v16  ;;  %v1456_v20 = vsel %vm1200_vm11, %v1027_v8, %v1328_v14  ;;  %1815 = vmatmul.msk.f32.gmra.mxu3 %vm305_vm1, %v294_v10  ;;  %1552 = vst [vmem:[%s2162_s8 + $0x248] sm:$0xff] %v1424_v19  ;;  %v201_v8 = vld [vmem:[%s2014_s30 + $0xe8] sm:$0xff] }
  0xe9   : > { %vm1105_vm12 = vcmp.gt.f32.partialorder %v742_v17, 0.0  ;;  %v1233_v21 = vmul.f32 0.2, %v742_v17  ;;  %1719 = vmatmul.msk.f32.gmra.mxu0 %vm305_vm1, %v198_v11  ;;  %1584 = vst [vmem:[%s2162_s8 + $0x348] sm:$0xff] %v1456_v20  ;;  %v233_v9 = vld [vmem:[%s2014_s30 + $0x1e8] sm:$0xff] }
  0xea   : > { %vm1137_vm13 = vcmp.gt.f32.partialorder %v838_v18, 0.0  ;;  %1751 = vmatmul.msk.f32.gmra.mxu1 %vm305_vm1, %v230_v12  ;;  %v1265_v22 = vmul.f32 0.2, %v838_v18  ;;  %v933_v24 = vpop.f32.mrf.mxu2 }
  0xeb   : > { %v1361_v23 = vsel %vm1105_vm12, %v742_v17, %v1233_v21  ;;  %v1029_v25 = vpop.f32.mrf.mxu3  ;;  %v934_v27 = vadd.f32 %v2148_v1, %v933_v24 }
  0xec   : > { %1489 = vst [vmem:[%s2162_s8 + $0x50] sm:$0xff] %v1361_v23  ;;  %v1393_v26 = vsel %vm1137_vm13, %v838_v18, %v1265_v22  ;;  %v1030_v28 = vadd.f32 %v2148_v1, %v1029_v25 }
  0xed   : > { %1521 = vst [vmem:[%s2162_s8 + $0x150] sm:$0xff] %v1393_v26  ;;  %vm1169_vm14 = vcmp.gt.f32.partialorder %v934_v27, 0.0  ;;  %v1297_v33 = vmul.f32 0.2, %v934_v27  ;;  %v266_v26 = vld [vmem:[%s2014_s30 + $0x2f0] sm:$0xff] }
  0xee   : > { %vm1201_vm15 = vcmp.gt.f32.partialorder %v1030_v28, 0.0  ;;  %v1329_v34 = vmul.f32 0.2, %v1030_v28  ;;  %v744_v35 = vpop.f32.mrf.mxu0 }
  0xef   : > { %v840_v36 = vpop.f32.mrf.mxu1  ;;  %v745_v37 = vadd.f32 %v2148_v1, %v744_v35  ;;  %v1425_v39 = vsel %vm1169_vm14, %v934_v27, %v1297_v33  ;;  %1784 = vmatmul.msk.f32.gmra.mxu2 %vm305_vm1, %v263_v29  ;;  %v298_v27 = vld [vmem:[%s2014_s30 + $0x3f0] sm:$0xff] }
  0xf0   : > { %v841_v38 = vadd.f32 %v2148_v1, %v840_v36  ;;  %v1457_v40 = vsel %vm1201_vm15, %v1030_v28, %v1329_v34  ;;  %1816 = vmatmul.msk.f32.gmra.mxu3 %vm305_vm1, %v295_v30  ;;  %1553 = vst [vmem:[%s2162_s8 + $0x250] sm:$0xff] %v1425_v39  ;;  %v202_v28 = vld [vmem:[%s2014_s30 + $0xf0] sm:$0xff] }
  0xf1   : > { %vm1106_vm0 = vcmp.gt.f32.partialorder %v745_v37, 0.0  ;;  %v1234_v41 = vmul.f32 0.2, %v745_v37  ;;  %1720 = vmatmul.msk.f32.gmra.mxu0 %vm305_vm1, %v199_v31  ;;  %1585 = vst [vmem:[%s2162_s8 + $0x350] sm:$0xff] %v1457_v40  ;;  %v234_v29 = vld [vmem:[%s2014_s30 + $0x1f0] sm:$0xff] }
  0xf2   : > { %vm1138_vm2 = vcmp.gt.f32.partialorder %v841_v38, 0.0  ;;  %1752 = vmatmul.msk.f32.gmra.mxu1 %vm305_vm1, %v231_v32  ;;  %v1266_v42 = vmul.f32 0.2, %v841_v38  ;;  %v936_v44 = vpop.f32.mrf.mxu2 }
  0xf3   : > { %v1362_v43 = vsel %vm1106_vm0, %v745_v37, %v1234_v41  ;;  %v1032_v45 = vpop.f32.mrf.mxu3  ;;  %v937_v47 = vadd.f32 %v2148_v1, %v936_v44 }
  0xf4   : > { %1490 = vst [vmem:[%s2162_s8 + $0x58] sm:$0xff] %v1362_v43  ;;  %v1394_v46 = vsel %vm1138_vm2, %v841_v38, %v1266_v42  ;;  %v1033_v48 = vadd.f32 %v2148_v1, %v1032_v45 }
  0xf5   : > { %1522 = vst [vmem:[%s2162_s8 + $0x158] sm:$0xff] %v1394_v46  ;;  %vm1170_vm3 = vcmp.gt.f32.partialorder %v937_v47, 0.0  ;;  %v1298_v53 = vmul.f32 0.2, %v937_v47  ;;  %v267_v46 = vld [vmem:[%s2014_s30 + $0x2f8] sm:$0xff] }
  0xf6   : > { %vm1202_vm4 = vcmp.gt.f32.partialorder %v1033_v48, 0.0  ;;  %v1330_v54 = vmul.f32 0.2, %v1033_v48  ;;  %v747_v55 = vpop.f32.mrf.mxu0 }
  0xf7   : > { %v843_v56 = vpop.f32.mrf.mxu1  ;;  %v748_v57 = vadd.f32 %v2148_v1, %v747_v55  ;;  %v1426_v59 = vsel %vm1170_vm3, %v937_v47, %v1298_v53  ;;  %1785 = vmatmul.msk.f32.gmra.mxu2 %vm305_vm1, %v264_v49  ;;  %v299_v47 = vld [vmem:[%s2014_s30 + $0x3f8] sm:$0xff] }
  0xf8   : > { %v844_v58 = vadd.f32 %v2148_v1, %v843_v56  ;;  %v1458_v60 = vsel %vm1202_vm4, %v1033_v48, %v1330_v54  ;;  %1817 = vmatmul.msk.f32.gmra.mxu3 %vm305_vm1, %v296_v50  ;;  %1554 = vst [vmem:[%s2162_s8 + $0x258] sm:$0xff] %v1426_v59  ;;  %v203_v48 = vld [vmem:[%s2014_s30 + $0xf8] sm:$0xff] }
  0xf9   : > { %vm1107_vm5 = vcmp.gt.f32.partialorder %v748_v57, 0.0  ;;  %v1235_v61 = vmul.f32 0.2, %v748_v57  ;;  %1721 = vmatmul.msk.f32.gmra.mxu0 %vm305_vm1, %v200_v51  ;;  %1586 = vst [vmem:[%s2162_s8 + $0x358] sm:$0xff] %v1458_v60  ;;  %v235_v49 = vld [vmem:[%s2014_s30 + $0x1f8] sm:$0xff]  ;;  %s1893_s30 = scalar_lea.hbm %s2580_s3, 2048 }
  0xfa   : > { %vm1139_vm6 = vcmp.gt.f32.partialorder %v844_v58, 0.0  ;;  %1753 = vmatmul.msk.f32.gmra.mxu1 %vm305_vm1, %v232_v52  ;;  %v1267_v62 = vmul.f32 0.2, %v844_v58  ;;  %v939_v0 = vpop.f32.mrf.mxu2  ;;  %p1895_p1 = scmp.lt.s32.totalorder %s1893_s30, %s1889_s27 }
  0xfb   : > { %v1363_v63 = vsel %vm1107_vm5, %v748_v57, %v1235_v61  ;;  %v1035_v2 = vpop.f32.mrf.mxu3  ;;  %v940_v4 = vadd.f32 %v2148_v1, %v939_v0 }
  0xfc   : > { %1491 = vst [vmem:[%s2162_s8 + $0x60] sm:$0xff] %v1363_v63  ;;  %v1395_v3 = vsel %vm1139_vm6, %v844_v58, %v1267_v62  ;;  %v1036_v5 = vadd.f32 %v2148_v1, %v1035_v2  ;;  %p1896_p2 = por %p1895_p1, %p1894_p0 }
  0xfd   : > { %1523 = vst [vmem:[%s2162_s8 + $0x160] sm:$0xff] %v1395_v3  ;;  %vm1171_vm7 = vcmp.gt.f32.partialorder %v940_v4, 0.0  ;;  %v1299_v10 = vmul.f32 0.2, %v940_v4 }
  0xfe   : > { %vm1203_vm8 = vcmp.gt.f32.partialorder %v1036_v5, 0.0  ;;  %v1331_v11 = vmul.f32 0.2, %v1036_v5  ;;  %v750_v12 = vpop.f32.mrf.mxu0  ;;  %p1897_p3 = pnand %p1896_p2, %p1892_p13 }
  0xff   : > { %v846_v13 = vpop.f32.mrf.mxu1  ;;  %v751_v14 = vadd.f32 %v2148_v1, %v750_v12  ;;  %v1427_v16 = vsel %vm1171_vm7, %v940_v4, %v1299_v10  ;;  %1786 = vmatmul.msk.f32.gmra.mxu2 %vm305_vm1, %v265_v6 }
 0x100   : > { %v847_v15 = vadd.f32 %v2148_v1, %v846_v13  ;;  %v1459_v17 = vsel %vm1203_vm8, %v1036_v5, %v1331_v11  ;;  %1818 = vmatmul.msk.f32.gmra.mxu3 %vm305_vm1, %v297_v7  ;;  %1555 = vst [vmem:[%s2162_s8 + $0x260] sm:$0xff] %v1427_v16  ;;  %v2411_v7 = vld [vmem:[%s2579_s2] ss:$0 sm:$0xff] }
 0x101   : > { %vm1108_vm9 = vcmp.gt.f32.partialorder %v751_v14, 0.0  ;;  %v1236_v18 = vmul.f32 0.2, %v751_v14  ;;  %1722 = vmatmul.msk.f32.gmra.mxu0 %vm305_vm1, %v201_v8  ;;  %1587 = vst [vmem:[%s2162_s8 + $0x360] sm:$0xff] %v1459_v17 }
 0x102   : > { %vm1140_vm10 = vcmp.gt.f32.partialorder %v847_v15, 0.0  ;;  %1754 = vmatmul.msk.f32.gmra.mxu1 %vm305_vm1, %v233_v9  ;;  %v1268_v19 = vmul.f32 0.2, %v847_v15  ;;  %v942_v21 = vpop.f32.mrf.mxu2 }
 0x103   : > { %v1364_v20 = vsel %vm1108_vm9, %v751_v14, %v1236_v18  ;;  %v1038_v22 = vpop.f32.mrf.mxu3  ;;  %v943_v24 = vadd.f32 %v2148_v1, %v942_v21 }
 0x104   : > { %1492 = vst [vmem:[%s2162_s8 + $0x68] sm:$0xff] %v1364_v20  ;;  %v1396_v23 = vsel %vm1140_vm10, %v847_v15, %v1268_v19  ;;  %v1039_v25 = vadd.f32 %v2148_v1, %v1038_v22 }
 0x105   : > { %1524 = vst [vmem:[%s2162_s8 + $0x168] sm:$0xff] %v1396_v23  ;;  %vm1172_vm11 = vcmp.gt.f32.partialorder %v943_v24, 0.0  ;;  %v1300_v30 = vmul.f32 0.2, %v943_v24 }
 0x106   : > { %vm1204_vm12 = vcmp.gt.f32.partialorder %v1039_v25, 0.0  ;;  %v1332_v31 = vmul.f32 0.2, %v1039_v25  ;;  %v753_v32 = vpop.f32.mrf.mxu0 }
 0x107   : > { %v849_v33 = vpop.f32.mrf.mxu1  ;;  %v754_v34 = vadd.f32 %v2148_v1, %v753_v32  ;;  %v1428_v36 = vsel %vm1172_vm11, %v943_v24, %v1300_v30  ;;  %1787 = vmatmul.msk.f32.gmra.mxu2 %vm305_vm1, %v266_v26 }
 0x108   : > { %v850_v35 = vadd.f32 %v2148_v1, %v849_v33  ;;  %v1460_v37 = vsel %vm1204_vm12, %v1039_v25, %v1332_v31  ;;  %1819 = vmatmul.msk.f32.gmra.mxu3 %vm305_vm1, %v298_v27  ;;  %1556 = vst [vmem:[%s2162_s8 + $0x268] sm:$0xff] %v1428_v36 }
 0x109   : > { %vm1109_vm13 = vcmp.gt.f32.partialorder %v754_v34, 0.0  ;;  %v1237_v38 = vmul.f32 0.2, %v754_v34  ;;  %1723 = vmatmul.msk.f32.gmra.mxu0 %vm305_vm1, %v202_v28  ;;  %1588 = vst [vmem:[%s2162_s8 + $0x368] sm:$0xff] %v1460_v37 }
 0x10a   : > { %vm1141_vm14 = vcmp.gt.f32.partialorder %v850_v35, 0.0  ;;  %1755 = vmatmul.msk.f32.gmra.mxu1 %vm305_vm1, %v234_v29  ;;  %v1269_v39 = vmul.f32 0.2, %v850_v35  ;;  %v945_v41 = vpop.f32.mrf.mxu2 }
 0x10b   : > { %v1365_v40 = vsel %vm1109_vm13, %v754_v34, %v1237_v38  ;;  %v1041_v42 = vpop.f32.mrf.mxu3  ;;  %v946_v44 = vadd.f32 %v2148_v1, %v945_v41 }
 0x10c   : > { %1493 = vst [vmem:[%s2162_s8 + $0x70] sm:$0xff] %v1365_v40  ;;  %v1397_v43 = vsel %vm1141_vm14, %v850_v35, %v1269_v39  ;;  %v1042_v45 = vadd.f32 %v2148_v1, %v1041_v42 }
 0x10d   : > { %1525 = vst [vmem:[%s2162_s8 + $0x170] sm:$0xff] %v1397_v43  ;;  %vm1173_vm15 = vcmp.gt.f32.partialorder %v946_v44, 0.0  ;;  %v1301_v50 = vmul.f32 0.2, %v946_v44 }
 0x10e   : > { %vm1205_vm0 = vcmp.gt.f32.partialorder %v1042_v45, 0.0  ;;  %v1333_v51 = vmul.f32 0.2, %v1042_v45  ;;  %v756_v52 = vpop.f32.mrf.mxu0 }
 0x10f   : > { %v852_v53 = vpop.f32.mrf.mxu1  ;;  %v757_v54 = vadd.f32 %v2148_v1, %v756_v52  ;;  %v1429_v56 = vsel %vm1173_vm15, %v946_v44, %v1301_v50  ;;  %1788 = vmatmul.msk.f32.gmra.mxu2 %vm305_vm1, %v267_v46 }
 0x110   : > { %v853_v55 = vadd.f32 %v2148_v1, %v852_v53  ;;  %v1461_v57 = vsel %vm1205_vm0, %v1042_v45, %v1333_v51  ;;  %1820 = vmatmul.msk.f32.gmra.mxu3 %vm305_vm1, %v299_v47  ;;  %1557 = vst [vmem:[%s2162_s8 + $0x270] sm:$0xff] %v1429_v56 }
 0x111   : > { %vm1110_vm2 = vcmp.gt.f32.partialorder %v757_v54, 0.0  ;;  %v1238_v58 = vmul.f32 0.2, %v757_v54  ;;  %1724 = vmatmul.msk.f32.gmra.mxu0 %vm305_vm1, %v203_v48  ;;  %1589 = vst [vmem:[%s2162_s8 + $0x370] sm:$0xff] %v1461_v57 }
 0x112   : > { %vm1142_vm3 = vcmp.gt.f32.partialorder %v853_v55, 0.0  ;;  %1756 = vmatmul.msk.f32.gmra.mxu1 %vm305_vm1, %v235_v49  ;;  %v1270_v59 = vmul.f32 0.2, %v853_v55  ;;  %v948_v61 = vpop.f32.mrf.mxu2 }
 0x113   : > { %v1366_v60 = vsel %vm1110_vm2, %v757_v54, %v1238_v58  ;;  %v1044_v62 = vpop.f32.mrf.mxu3  ;;  %v949_v0 = vadd.f32 %v2148_v1, %v948_v61 }
 0x114   : > { %1494 = vst [vmem:[%s2162_s8 + $0x78] sm:$0xff] %v1366_v60  ;;  %v1398_v63 = vsel %vm1142_vm3, %v853_v55, %v1270_v59  ;;  %v1045_v2 = vadd.f32 %v2148_v1, %v1044_v62 }
 0x115   : > { %1526 = vst [vmem:[%s2162_s8 + $0x178] sm:$0xff] %v1398_v63  ;;  %vm1174_vm4 = vcmp.gt.f32.partialorder %v949_v0, 0.0  ;;  %v1302_v3 = vmul.f32 0.2, %v949_v0 }
 0x116   : > { %vm1206_vm5 = vcmp.gt.f32.partialorder %v1045_v2, 0.0  ;;  %v1334_v4 = vmul.f32 0.2, %v1045_v2  ;;  %v759_v5 = vpop.f32.mrf.mxu0 }
 0x117   : > { %v855_v6 = vpop.f32.mrf.mxu1  ;;  %v760_v8 = vadd.f32 %v2411_v7, %v759_v5  ;;  %v1430_v1 = vsel %vm1174_vm4, %v949_v0, %v1302_v3 }
 0x118   : > { %v856_v9 = vadd.f32 %v2411_v7, %v855_v6  ;;  %v1462_v10 = vsel %vm1206_vm5, %v1045_v2, %v1334_v4  ;;  %1558 = vst [vmem:[%s2162_s8 + $0x278] sm:$0xff] %v1430_v1 }
 0x119   : > { %vm1111_vm1 = vcmp.gt.f32.partialorder %v760_v8, 0.0  ;;  %v1239_v11 = vmul.f32 0.2, %v760_v8  ;;  %1590 = vst [vmem:[%s2162_s8 + $0x378] sm:$0xff] %v1462_v10 }
 0x11a   : > { %vm1143_vm6 = vcmp.gt.f32.partialorder %v856_v9, 0.0  ;;  %v1271_v12 = vmul.f32 0.2, %v856_v9  ;;  %v951_v14 = vpop.f32.mrf.mxu2 }
 0x11b   : > { %v1367_v13 = vsel %vm1111_vm1, %v760_v8, %v1239_v11  ;;  %v1047_v15 = vpop.f32.mrf.mxu3  ;;  %v952_v17 = vadd.f32 %v2411_v7, %v951_v14 }
 0x11c   : > { %1495 = vst [vmem:[%s2162_s8 + $0x80] sm:$0xff] %v1367_v13  ;;  %v1399_v16 = vsel %vm1143_vm6, %v856_v9, %v1271_v12  ;;  %v1048_v18 = vadd.f32 %v2411_v7, %v1047_v15 }
 0x11d   : > { %1527 = vst [vmem:[%s2162_s8 + $0x180] sm:$0xff] %v1399_v16  ;;  %vm1175_vm7 = vcmp.gt.f32.partialorder %v952_v17, 0.0  ;;  %v1303_v19 = vmul.f32 0.2, %v952_v17 }
 0x11e   : > { %vm1207_vm8 = vcmp.gt.f32.partialorder %v1048_v18, 0.0  ;;  %v1335_v20 = vmul.f32 0.2, %v1048_v18  ;;  %v762_v21 = vpop.f32.mrf.mxu0 }
 0x11f   : > { %v858_v22 = vpop.f32.mrf.mxu1  ;;  %v763_v23 = vadd.f32 %v2411_v7, %v762_v21  ;;  %v1431_v25 = vsel %vm1175_vm7, %v952_v17, %v1303_v19 }
 0x120   : > { %v859_v24 = vadd.f32 %v2411_v7, %v858_v22  ;;  %v1463_v26 = vsel %vm1207_vm8, %v1048_v18, %v1335_v20  ;;  %1559 = vst [vmem:[%s2162_s8 + $0x280] sm:$0xff] %v1431_v25 }
 0x121   : > { %vm1112_vm9 = vcmp.gt.f32.partialorder %v763_v23, 0.0  ;;  %v1240_v27 = vmul.f32 0.2, %v763_v23  ;;  %1591 = vst [vmem:[%s2162_s8 + $0x380] sm:$0xff] %v1463_v26 }
 0x122   : > { %vm1144_vm10 = vcmp.gt.f32.partialorder %v859_v24, 0.0  ;;  %v1272_v28 = vmul.f32 0.2, %v859_v24  ;;  %v954_v30 = vpop.f32.mrf.mxu2 }
 0x123   : > { %v1368_v29 = vsel %vm1112_vm9, %v763_v23, %v1240_v27  ;;  %v1050_v31 = vpop.f32.mrf.mxu3  ;;  %v955_v33 = vadd.f32 %v2411_v7, %v954_v30 }
 0x124   : > { %1496 = vst [vmem:[%s2162_s8 + $0x88] sm:$0xff] %v1368_v29  ;;  %v1400_v32 = vsel %vm1144_vm10, %v859_v24, %v1272_v28  ;;  %v1051_v34 = vadd.f32 %v2411_v7, %v1050_v31 }
 0x125   : > { %1528 = vst [vmem:[%s2162_s8 + $0x188] sm:$0xff] %v1400_v32  ;;  %vm1176_vm11 = vcmp.gt.f32.partialorder %v955_v33, 0.0  ;;  %v1304_v35 = vmul.f32 0.2, %v955_v33 }
 0x126   : > { %vm1208_vm12 = vcmp.gt.f32.partialorder %v1051_v34, 0.0  ;;  %v1336_v36 = vmul.f32 0.2, %v1051_v34  ;;  %v765_v37 = vpop.f32.mrf.mxu0 }
 0x127   : > { %v861_v38 = vpop.f32.mrf.mxu1  ;;  %v766_v39 = vadd.f32 %v2411_v7, %v765_v37  ;;  %v1432_v41 = vsel %vm1176_vm11, %v955_v33, %v1304_v35 }
 0x128   : > { %v862_v40 = vadd.f32 %v2411_v7, %v861_v38  ;;  %v1464_v42 = vsel %vm1208_vm12, %v1051_v34, %v1336_v36  ;;  %1560 = vst [vmem:[%s2162_s8 + $0x288] sm:$0xff] %v1432_v41 }
 0x129   : > { %vm1113_vm13 = vcmp.gt.f32.partialorder %v766_v39, 0.0  ;;  %v1241_v43 = vmul.f32 0.2, %v766_v39  ;;  %1592 = vst [vmem:[%s2162_s8 + $0x388] sm:$0xff] %v1464_v42 }
 0x12a   : > { %vm1145_vm14 = vcmp.gt.f32.partialorder %v862_v40, 0.0  ;;  %v1273_v44 = vmul.f32 0.2, %v862_v40  ;;  %v957_v46 = vpop.f32.mrf.mxu2 }
 0x12b   : > { %v1369_v45 = vsel %vm1113_vm13, %v766_v39, %v1241_v43  ;;  %v1053_v47 = vpop.f32.mrf.mxu3  ;;  %v958_v49 = vadd.f32 %v2411_v7, %v957_v46 }
 0x12c   : > { %1497 = vst [vmem:[%s2162_s8 + $0x90] sm:$0xff] %v1369_v45  ;;  %v1401_v48 = vsel %vm1145_vm14, %v862_v40, %v1273_v44  ;;  %v1054_v50 = vadd.f32 %v2411_v7, %v1053_v47 }
 0x12d   : > { %1529 = vst [vmem:[%s2162_s8 + $0x190] sm:$0xff] %v1401_v48  ;;  %vm1177_vm15 = vcmp.gt.f32.partialorder %v958_v49, 0.0  ;;  %v1305_v51 = vmul.f32 0.2, %v958_v49 }
 0x12e   : > { %vm1209_vm0 = vcmp.gt.f32.partialorder %v1054_v50, 0.0  ;;  %v1337_v52 = vmul.f32 0.2, %v1054_v50  ;;  %v768_v53 = vpop.f32.mrf.mxu0 }
 0x12f   : > { %v864_v54 = vpop.f32.mrf.mxu1  ;;  %v769_v55 = vadd.f32 %v2411_v7, %v768_v53  ;;  %v1433_v57 = vsel %vm1177_vm15, %v958_v49, %v1305_v51 }
 0x130   : > { %v865_v56 = vadd.f32 %v2411_v7, %v864_v54  ;;  %v1465_v58 = vsel %vm1209_vm0, %v1054_v50, %v1337_v52  ;;  %1561 = vst [vmem:[%s2162_s8 + $0x290] sm:$0xff] %v1433_v57 }
 0x131   : > { %vm1114_vm2 = vcmp.gt.f32.partialorder %v769_v55, 0.0  ;;  %v1242_v59 = vmul.f32 0.2, %v769_v55  ;;  %1593 = vst [vmem:[%s2162_s8 + $0x390] sm:$0xff] %v1465_v58 }
 0x132   : > { %vm1146_vm3 = vcmp.gt.f32.partialorder %v865_v56, 0.0  ;;  %v1274_v60 = vmul.f32 0.2, %v865_v56  ;;  %v960_v62 = vpop.f32.mrf.mxu2 }
 0x133   : > { %v1370_v61 = vsel %vm1114_vm2, %v769_v55, %v1242_v59  ;;  %v1056_v63 = vpop.f32.mrf.mxu3  ;;  %v961_v2 = vadd.f32 %v2411_v7, %v960_v62 }
 0x134   : > { %1498 = vst [vmem:[%s2162_s8 + $0x98] sm:$0xff] %v1370_v61  ;;  %v1402_v0 = vsel %vm1146_vm3, %v865_v56, %v1274_v60  ;;  %v1057_v3 = vadd.f32 %v2411_v7, %v1056_v63 }
 0x135   : > { %1530 = vst [vmem:[%s2162_s8 + $0x198] sm:$0xff] %v1402_v0  ;;  %vm1178_vm4 = vcmp.gt.f32.partialorder %v961_v2, 0.0  ;;  %v1306_v4 = vmul.f32 0.2, %v961_v2 }
 0x136   : > { %vm1210_vm5 = vcmp.gt.f32.partialorder %v1057_v3, 0.0  ;;  %v1338_v5 = vmul.f32 0.2, %v1057_v3  ;;  %v771_v6 = vpop.f32.mrf.mxu0 }
 0x137   : > { %v867_v8 = vpop.f32.mrf.mxu1  ;;  %v772_v9 = vadd.f32 %v2411_v7, %v771_v6  ;;  %v1434_v10 = vsel %vm1178_vm4, %v961_v2, %v1306_v4 }
 0x138   : > { %v868_v1 = vadd.f32 %v2411_v7, %v867_v8  ;;  %v1466_v11 = vsel %vm1210_vm5, %v1057_v3, %v1338_v5  ;;  %1562 = vst [vmem:[%s2162_s8 + $0x298] sm:$0xff] %v1434_v10 }
 0x139   : > { %vm1115_vm1 = vcmp.gt.f32.partialorder %v772_v9, 0.0  ;;  %v1243_v12 = vmul.f32 0.2, %v772_v9  ;;  %1594 = vst [vmem:[%s2162_s8 + $0x398] sm:$0xff] %v1466_v11 }
 0x13a   : > { %vm1147_vm6 = vcmp.gt.f32.partialorder %v868_v1, 0.0  ;;  %v1275_v13 = vmul.f32 0.2, %v868_v1  ;;  %v963_v15 = vpop.f32.mrf.mxu2 }
 0x13b   : > { %v1371_v14 = vsel %vm1115_vm1, %v772_v9, %v1243_v12  ;;  %v1059_v16 = vpop.f32.mrf.mxu3  ;;  %v964_v18 = vadd.f32 %v2411_v7, %v963_v15 }
 0x13c   : > { %1499 = vst [vmem:[%s2162_s8 + $0xa0] sm:$0xff] %v1371_v14  ;;  %v1403_v17 = vsel %vm1147_vm6, %v868_v1, %v1275_v13  ;;  %v1060_v19 = vadd.f32 %v2411_v7, %v1059_v16 }
 0x13d   : > { %1531 = vst [vmem:[%s2162_s8 + $0x1a0] sm:$0xff] %v1403_v17  ;;  %vm1179_vm7 = vcmp.gt.f32.partialorder %v964_v18, 0.0  ;;  %v1307_v20 = vmul.f32 0.2, %v964_v18 }
 0x13e   : > { %vm1211_vm8 = vcmp.gt.f32.partialorder %v1060_v19, 0.0  ;;  %v1339_v21 = vmul.f32 0.2, %v1060_v19  ;;  %v774_v22 = vpop.f32.mrf.mxu0 }
 0x13f   : > { %v870_v23 = vpop.f32.mrf.mxu1  ;;  %v775_v24 = vadd.f32 %v2411_v7, %v774_v22  ;;  %v1435_v26 = vsel %vm1179_vm7, %v964_v18, %v1307_v20 }
 0x140   : > { %v871_v25 = vadd.f32 %v2411_v7, %v870_v23  ;;  %v1467_v27 = vsel %vm1211_vm8, %v1060_v19, %v1339_v21  ;;  %1563 = vst [vmem:[%s2162_s8 + $0x2a0] sm:$0xff] %v1435_v26 }
 0x141   : > { %vm1116_vm9 = vcmp.gt.f32.partialorder %v775_v24, 0.0  ;;  %v1244_v28 = vmul.f32 0.2, %v775_v24  ;;  %1595 = vst [vmem:[%s2162_s8 + $0x3a0] sm:$0xff] %v1467_v27 }
 0x142   : > { %vm1148_vm10 = vcmp.gt.f32.partialorder %v871_v25, 0.0  ;;  %v1276_v29 = vmul.f32 0.2, %v871_v25  ;;  %v966_v31 = vpop.f32.mrf.mxu2 }
 0x143   : > { %v1372_v30 = vsel %vm1116_vm9, %v775_v24, %v1244_v28  ;;  %v1062_v32 = vpop.f32.mrf.mxu3  ;;  %v967_v34 = vadd.f32 %v2411_v7, %v966_v31 }
 0x144   : > { %1500 = vst [vmem:[%s2162_s8 + $0xa8] sm:$0xff] %v1372_v30  ;;  %v1404_v33 = vsel %vm1148_vm10, %v871_v25, %v1276_v29  ;;  %v1063_v35 = vadd.f32 %v2411_v7, %v1062_v32 }
 0x145   : > { %1532 = vst [vmem:[%s2162_s8 + $0x1a8] sm:$0xff] %v1404_v33  ;;  %vm1180_vm11 = vcmp.gt.f32.partialorder %v967_v34, 0.0  ;;  %v1308_v36 = vmul.f32 0.2, %v967_v34 }
 0x146   : > { %vm1212_vm12 = vcmp.gt.f32.partialorder %v1063_v35, 0.0  ;;  %v1340_v37 = vmul.f32 0.2, %v1063_v35  ;;  %v777_v38 = vpop.f32.mrf.mxu0 }
 0x147   : > { %v873_v39 = vpop.f32.mrf.mxu1  ;;  %v778_v40 = vadd.f32 %v2411_v7, %v777_v38  ;;  %v1436_v42 = vsel %vm1180_vm11, %v967_v34, %v1308_v36 }
 0x148   : > { %v874_v41 = vadd.f32 %v2411_v7, %v873_v39  ;;  %v1468_v43 = vsel %vm1212_vm12, %v1063_v35, %v1340_v37  ;;  %1564 = vst [vmem:[%s2162_s8 + $0x2a8] sm:$0xff] %v1436_v42 }
 0x149   : > { %vm1117_vm13 = vcmp.gt.f32.partialorder %v778_v40, 0.0  ;;  %v1245_v44 = vmul.f32 0.2, %v778_v40  ;;  %1596 = vst [vmem:[%s2162_s8 + $0x3a8] sm:$0xff] %v1468_v43 }
 0x14a   : > { %vm1149_vm14 = vcmp.gt.f32.partialorder %v874_v41, 0.0  ;;  %v1277_v45 = vmul.f32 0.2, %v874_v41  ;;  %v969_v47 = vpop.f32.mrf.mxu2 }
 0x14b   : > { %v1373_v46 = vsel %vm1117_vm13, %v778_v40, %v1245_v44  ;;  %v1065_v48 = vpop.f32.mrf.mxu3  ;;  %v970_v50 = vadd.f32 %v2411_v7, %v969_v47 }
 0x14c   : > { %1501 = vst [vmem:[%s2162_s8 + $0xb0] sm:$0xff] %v1373_v46  ;;  %v1405_v49 = vsel %vm1149_vm14, %v874_v41, %v1277_v45  ;;  %v1066_v51 = vadd.f32 %v2411_v7, %v1065_v48 }
 0x14d   : > { %1533 = vst [vmem:[%s2162_s8 + $0x1b0] sm:$0xff] %v1405_v49  ;;  %vm1181_vm15 = vcmp.gt.f32.partialorder %v970_v50, 0.0  ;;  %v1309_v52 = vmul.f32 0.2, %v970_v50 }
 0x14e   : > { %vm1213_vm0 = vcmp.gt.f32.partialorder %v1066_v51, 0.0  ;;  %v1341_v53 = vmul.f32 0.2, %v1066_v51  ;;  %v780_v54 = vpop.f32.mrf.mxu0 }
 0x14f   : > { %v876_v55 = vpop.f32.mrf.mxu1  ;;  %v781_v56 = vadd.f32 %v2411_v7, %v780_v54  ;;  %v1437_v58 = vsel %vm1181_vm15, %v970_v50, %v1309_v52 }
 0x150   : > { %v877_v57 = vadd.f32 %v2411_v7, %v876_v55  ;;  %v1469_v59 = vsel %vm1213_vm0, %v1066_v51, %v1341_v53  ;;  %1565 = vst [vmem:[%s2162_s8 + $0x2b0] sm:$0xff] %v1437_v58 }
 0x151   : > { %vm1118_vm2 = vcmp.gt.f32.partialorder %v781_v56, 0.0  ;;  %v1246_v60 = vmul.f32 0.2, %v781_v56  ;;  %1597 = vst [vmem:[%s2162_s8 + $0x3b0] sm:$0xff] %v1469_v59 }
 0x152   : > { %vm1150_vm3 = vcmp.gt.f32.partialorder %v877_v57, 0.0  ;;  %v1278_v61 = vmul.f32 0.2, %v877_v57  ;;  %v972_v63 = vpop.f32.mrf.mxu2 }
 0x153   : > { %v1374_v62 = vsel %vm1118_vm2, %v781_v56, %v1246_v60  ;;  %v1068_v0 = vpop.f32.mrf.mxu3  ;;  %v973_v3 = vadd.f32 %v2411_v7, %v972_v63 }
 0x154   : > { %1502 = vst [vmem:[%s2162_s8 + $0xb8] sm:$0xff] %v1374_v62  ;;  %v1406_v2 = vsel %vm1150_vm3, %v877_v57, %v1278_v61  ;;  %v1069_v4 = vadd.f32 %v2411_v7, %v1068_v0 }
 0x155   : > { %1534 = vst [vmem:[%s2162_s8 + $0x1b8] sm:$0xff] %v1406_v2  ;;  %vm1182_vm4 = vcmp.gt.f32.partialorder %v973_v3, 0.0  ;;  %v1310_v5 = vmul.f32 0.2, %v973_v3 }
 0x156   : > { %vm1214_vm5 = vcmp.gt.f32.partialorder %v1069_v4, 0.0  ;;  %v1342_v6 = vmul.f32 0.2, %v1069_v4  ;;  %v783_v8 = vpop.f32.mrf.mxu0 }
 0x157   : > { %v879_v9 = vpop.f32.mrf.mxu1  ;;  %v784_v1 = vadd.f32 %v2411_v7, %v783_v8  ;;  %v1438_v11 = vsel %vm1182_vm4, %v973_v3, %v1310_v5 }
 0x158   : > { %v880_v10 = vadd.f32 %v2411_v7, %v879_v9  ;;  %v1470_v12 = vsel %vm1214_vm5, %v1069_v4, %v1342_v6  ;;  %1566 = vst [vmem:[%s2162_s8 + $0x2b8] sm:$0xff] %v1438_v11 }
 0x159   : > { %vm1119_vm1 = vcmp.gt.f32.partialorder %v784_v1, 0.0  ;;  %v1247_v13 = vmul.f32 0.2, %v784_v1  ;;  %1598 = vst [vmem:[%s2162_s8 + $0x3b8] sm:$0xff] %v1470_v12 }
 0x15a   : > { %vm1151_vm6 = vcmp.gt.f32.partialorder %v880_v10, 0.0  ;;  %v1279_v14 = vmul.f32 0.2, %v880_v10  ;;  %v975_v16 = vpop.f32.mrf.mxu2 }
 0x15b   : > { %v1375_v15 = vsel %vm1119_vm1, %v784_v1, %v1247_v13  ;;  %v1071_v17 = vpop.f32.mrf.mxu3  ;;  %v976_v19 = vadd.f32 %v2411_v7, %v975_v16 }
 0x15c   : > { %1503 = vst [vmem:[%s2162_s8 + $0xc0] sm:$0xff] %v1375_v15  ;;  %v1407_v18 = vsel %vm1151_vm6, %v880_v10, %v1279_v14  ;;  %v1072_v20 = vadd.f32 %v2411_v7, %v1071_v17 }
 0x15d   : > { %1535 = vst [vmem:[%s2162_s8 + $0x1c0] sm:$0xff] %v1407_v18  ;;  %vm1183_vm7 = vcmp.gt.f32.partialorder %v976_v19, 0.0  ;;  %v1311_v21 = vmul.f32 0.2, %v976_v19 }
 0x15e   : > { %vm1215_vm8 = vcmp.gt.f32.partialorder %v1072_v20, 0.0  ;;  %v1343_v22 = vmul.f32 0.2, %v1072_v20  ;;  %v786_v23 = vpop.f32.mrf.mxu0 }
 0x15f   : > { %v882_v24 = vpop.f32.mrf.mxu1  ;;  %v787_v25 = vadd.f32 %v2411_v7, %v786_v23  ;;  %v1439_v27 = vsel %vm1183_vm7, %v976_v19, %v1311_v21 }
 0x160   : > { %v883_v26 = vadd.f32 %v2411_v7, %v882_v24  ;;  %v1471_v28 = vsel %vm1215_vm8, %v1072_v20, %v1343_v22  ;;  %1567 = vst [vmem:[%s2162_s8 + $0x2c0] sm:$0xff] %v1439_v27 }
 0x161   : > { %vm1120_vm9 = vcmp.gt.f32.partialorder %v787_v25, 0.0  ;;  %v1248_v29 = vmul.f32 0.2, %v787_v25  ;;  %1599 = vst [vmem:[%s2162_s8 + $0x3c0] sm:$0xff] %v1471_v28 }
 0x162   : > { %vm1152_vm10 = vcmp.gt.f32.partialorder %v883_v26, 0.0  ;;  %v1280_v30 = vmul.f32 0.2, %v883_v26  ;;  %v978_v32 = vpop.f32.mrf.mxu2 }
 0x163   : > { %v1376_v31 = vsel %vm1120_vm9, %v787_v25, %v1248_v29  ;;  %v1074_v33 = vpop.f32.mrf.mxu3  ;;  %v979_v35 = vadd.f32 %v2411_v7, %v978_v32 }
 0x164   : > { %1504 = vst [vmem:[%s2162_s8 + $0xc8] sm:$0xff] %v1376_v31  ;;  %v1408_v34 = vsel %vm1152_vm10, %v883_v26, %v1280_v30  ;;  %v1075_v36 = vadd.f32 %v2411_v7, %v1074_v33 }
 0x165   : > { %1536 = vst [vmem:[%s2162_s8 + $0x1c8] sm:$0xff] %v1408_v34  ;;  %vm1184_vm11 = vcmp.gt.f32.partialorder %v979_v35, 0.0  ;;  %v1312_v37 = vmul.f32 0.2, %v979_v35 }
 0x166   : > { %vm1216_vm12 = vcmp.gt.f32.partialorder %v1075_v36, 0.0  ;;  %v1344_v38 = vmul.f32 0.2, %v1075_v36  ;;  %v789_v39 = vpop.f32.mrf.mxu0 }
 0x167   : > { %v885_v40 = vpop.f32.mrf.mxu1  ;;  %v790_v41 = vadd.f32 %v2411_v7, %v789_v39  ;;  %v1440_v43 = vsel %vm1184_vm11, %v979_v35, %v1312_v37 }
 0x168   : > { %v886_v42 = vadd.f32 %v2411_v7, %v885_v40  ;;  %v1472_v44 = vsel %vm1216_vm12, %v1075_v36, %v1344_v38  ;;  %1568 = vst [vmem:[%s2162_s8 + $0x2c8] sm:$0xff] %v1440_v43 }
 0x169   : > { %vm1121_vm13 = vcmp.gt.f32.partialorder %v790_v41, 0.0  ;;  %v1249_v45 = vmul.f32 0.2, %v790_v41  ;;  %1600 = vst [vmem:[%s2162_s8 + $0x3c8] sm:$0xff] %v1472_v44 }
 0x16a   : > { %vm1153_vm14 = vcmp.gt.f32.partialorder %v886_v42, 0.0  ;;  %v1281_v46 = vmul.f32 0.2, %v886_v42  ;;  %v981_v48 = vpop.f32.mrf.mxu2 }
 0x16b   : > { %v1377_v47 = vsel %vm1121_vm13, %v790_v41, %v1249_v45  ;;  %v1077_v49 = vpop.f32.mrf.mxu3  ;;  %v982_v51 = vadd.f32 %v2411_v7, %v981_v48 }
 0x16c   : > { %1505 = vst [vmem:[%s2162_s8 + $0xd0] sm:$0xff] %v1377_v47  ;;  %v1409_v50 = vsel %vm1153_vm14, %v886_v42, %v1281_v46  ;;  %v1078_v52 = vadd.f32 %v2411_v7, %v1077_v49 }
 0x16d   : > { %1537 = vst [vmem:[%s2162_s8 + $0x1d0] sm:$0xff] %v1409_v50  ;;  %vm1185_vm15 = vcmp.gt.f32.partialorder %v982_v51, 0.0  ;;  %v1313_v53 = vmul.f32 0.2, %v982_v51 }
 0x16e   : > { %vm1217_vm0 = vcmp.gt.f32.partialorder %v1078_v52, 0.0  ;;  %v1345_v54 = vmul.f32 0.2, %v1078_v52  ;;  %v792_v55 = vpop.f32.mrf.mxu0 }
 0x16f   : > { %v888_v56 = vpop.f32.mrf.mxu1  ;;  %v793_v57 = vadd.f32 %v2411_v7, %v792_v55  ;;  %v1441_v59 = vsel %vm1185_vm15, %v982_v51, %v1313_v53 }
 0x170   : > { %v889_v58 = vadd.f32 %v2411_v7, %v888_v56  ;;  %v1473_v60 = vsel %vm1217_vm0, %v1078_v52, %v1345_v54  ;;  %1569 = vst [vmem:[%s2162_s8 + $0x2d0] sm:$0xff] %v1441_v59 }
 0x171   : > { %vm1122_vm2 = vcmp.gt.f32.partialorder %v793_v57, 0.0  ;;  %v1250_v61 = vmul.f32 0.2, %v793_v57  ;;  %1601 = vst [vmem:[%s2162_s8 + $0x3d0] sm:$0xff] %v1473_v60 }
 0x172   : > { %vm1154_vm3 = vcmp.gt.f32.partialorder %v889_v58, 0.0  ;;  %v1282_v62 = vmul.f32 0.2, %v889_v58  ;;  %v984_v0 = vpop.f32.mrf.mxu2 }
 0x173   : > { %v1378_v63 = vsel %vm1122_vm2, %v793_v57, %v1250_v61  ;;  %v1080_v2 = vpop.f32.mrf.mxu3  ;;  %v985_v4 = vadd.f32 %v2411_v7, %v984_v0 }
 0x174   : > { %1506 = vst [vmem:[%s2162_s8 + $0xd8] sm:$0xff] %v1378_v63  ;;  %v1410_v3 = vsel %vm1154_vm3, %v889_v58, %v1282_v62  ;;  %v1081_v5 = vadd.f32 %v2411_v7, %v1080_v2 }
 0x175   : > { %1538 = vst [vmem:[%s2162_s8 + $0x1d8] sm:$0xff] %v1410_v3  ;;  %vm1186_vm4 = vcmp.gt.f32.partialorder %v985_v4, 0.0  ;;  %v1314_v6 = vmul.f32 0.2, %v985_v4 }
 0x176   : > { %vm1218_vm5 = vcmp.gt.f32.partialorder %v1081_v5, 0.0  ;;  %v1346_v8 = vmul.f32 0.2, %v1081_v5  ;;  %v795_v9 = vpop.f32.mrf.mxu0 }
 0x177   : > { %v891_v1 = vpop.f32.mrf.mxu1  ;;  %v796_v10 = vadd.f32 %v2411_v7, %v795_v9  ;;  %v1442_v12 = vsel %vm1186_vm4, %v985_v4, %v1314_v6 }
 0x178   : > { %v892_v11 = vadd.f32 %v2411_v7, %v891_v1  ;;  %v1474_v13 = vsel %vm1218_vm5, %v1081_v5, %v1346_v8  ;;  %1570 = vst [vmem:[%s2162_s8 + $0x2d8] sm:$0xff] %v1442_v12 }
 0x179   : > { %vm1123_vm1 = vcmp.gt.f32.partialorder %v796_v10, 0.0  ;;  %v1251_v14 = vmul.f32 0.2, %v796_v10  ;;  %1602 = vst [vmem:[%s2162_s8 + $0x3d8] sm:$0xff] %v1474_v13 }
 0x17a   : > { %vm1155_vm6 = vcmp.gt.f32.partialorder %v892_v11, 0.0  ;;  %v1283_v15 = vmul.f32 0.2, %v892_v11  ;;  %v987_v17 = vpop.f32.mrf.mxu2 }
 0x17b   : > { %v1379_v16 = vsel %vm1123_vm1, %v796_v10, %v1251_v14  ;;  %v1083_v18 = vpop.f32.mrf.mxu3  ;;  %v988_v20 = vadd.f32 %v2411_v7, %v987_v17 }
 0x17c   : > { %1507 = vst [vmem:[%s2162_s8 + $0xe0] sm:$0xff] %v1379_v16  ;;  %v1411_v19 = vsel %vm1155_vm6, %v892_v11, %v1283_v15  ;;  %v1084_v21 = vadd.f32 %v2411_v7, %v1083_v18 }
 0x17d   : > { %1539 = vst [vmem:[%s2162_s8 + $0x1e0] sm:$0xff] %v1411_v19  ;;  %vm1187_vm7 = vcmp.gt.f32.partialorder %v988_v20, 0.0  ;;  %v1315_v22 = vmul.f32 0.2, %v988_v20 }
 0x17e   : > { %vm1219_vm8 = vcmp.gt.f32.partialorder %v1084_v21, 0.0  ;;  %v1347_v23 = vmul.f32 0.2, %v1084_v21  ;;  %v798_v24 = vpop.f32.mrf.mxu0 }
 0x17f   : > { %v894_v25 = vpop.f32.mrf.mxu1  ;;  %v799_v26 = vadd.f32 %v2411_v7, %v798_v24  ;;  %v1443_v28 = vsel %vm1187_vm7, %v988_v20, %v1315_v22 }
 0x180   : > { %v895_v27 = vadd.f32 %v2411_v7, %v894_v25  ;;  %v1475_v29 = vsel %vm1219_vm8, %v1084_v21, %v1347_v23  ;;  %1571 = vst [vmem:[%s2162_s8 + $0x2e0] sm:$0xff] %v1443_v28 }
 0x181   : > { %vm1124_vm9 = vcmp.gt.f32.partialorder %v799_v26, 0.0  ;;  %v1252_v30 = vmul.f32 0.2, %v799_v26  ;;  %1603 = vst [vmem:[%s2162_s8 + $0x3e0] sm:$0xff] %v1475_v29 }
 0x182   : > { %vm1156_vm10 = vcmp.gt.f32.partialorder %v895_v27, 0.0  ;;  %v1284_v31 = vmul.f32 0.2, %v895_v27  ;;  %v990_v33 = vpop.f32.mrf.mxu2 }
 0x183   : > { %v1380_v32 = vsel %vm1124_vm9, %v799_v26, %v1252_v30  ;;  %v1086_v34 = vpop.f32.mrf.mxu3  ;;  %v991_v36 = vadd.f32 %v2411_v7, %v990_v33 }
 0x184   : > { %1508 = vst [vmem:[%s2162_s8 + $0xe8] sm:$0xff] %v1380_v32  ;;  %v1412_v35 = vsel %vm1156_vm10, %v895_v27, %v1284_v31  ;;  %v1087_v37 = vadd.f32 %v2411_v7, %v1086_v34 }
 0x185   : > { %1540 = vst [vmem:[%s2162_s8 + $0x1e8] sm:$0xff] %v1412_v35  ;;  %vm1188_vm11 = vcmp.gt.f32.partialorder %v991_v36, 0.0  ;;  %v1316_v38 = vmul.f32 0.2, %v991_v36 }
 0x186   : > { %vm1220_vm12 = vcmp.gt.f32.partialorder %v1087_v37, 0.0  ;;  %v1348_v39 = vmul.f32 0.2, %v1087_v37  ;;  %v801_v40 = vpop.f32.mrf.mxu0 }
 0x187   : > { %v897_v41 = vpop.f32.mrf.mxu1  ;;  %v802_v42 = vadd.f32 %v2411_v7, %v801_v40  ;;  %v1444_v44 = vsel %vm1188_vm11, %v991_v36, %v1316_v38 }
 0x188   : > { %v898_v43 = vadd.f32 %v2411_v7, %v897_v41  ;;  %v1476_v45 = vsel %vm1220_vm12, %v1087_v37, %v1348_v39  ;;  %1572 = vst [vmem:[%s2162_s8 + $0x2e8] sm:$0xff] %v1444_v44 }
 0x189   : > { %vm1125_vm13 = vcmp.gt.f32.partialorder %v802_v42, 0.0  ;;  %v1253_v46 = vmul.f32 0.2, %v802_v42  ;;  %1604 = vst [vmem:[%s2162_s8 + $0x3e8] sm:$0xff] %v1476_v45 }
 0x18a   : > { %vm1157_vm14 = vcmp.gt.f32.partialorder %v898_v43, 0.0  ;;  %v1285_v47 = vmul.f32 0.2, %v898_v43  ;;  %v993_v49 = vpop.f32.mrf.mxu2 }
 0x18b   : > { %v1381_v48 = vsel %vm1125_vm13, %v802_v42, %v1253_v46  ;;  %v1089_v50 = vpop.f32.mrf.mxu3  ;;  %v994_v52 = vadd.f32 %v2411_v7, %v993_v49 }
 0x18c   : > { %1509 = vst [vmem:[%s2162_s8 + $0xf0] sm:$0xff] %v1381_v48  ;;  %v1413_v51 = vsel %vm1157_vm14, %v898_v43, %v1285_v47  ;;  %v1090_v53 = vadd.f32 %v2411_v7, %v1089_v50 }
 0x18d   : > { %1541 = vst [vmem:[%s2162_s8 + $0x1f0] sm:$0xff] %v1413_v51  ;;  %vm1189_vm15 = vcmp.gt.f32.partialorder %v994_v52, 0.0  ;;  %v1317_v54 = vmul.f32 0.2, %v994_v52 }
 0x18e   : > { %vm1221_vm0 = vcmp.gt.f32.partialorder %v1090_v53, 0.0  ;;  %v1349_v55 = vmul.f32 0.2, %v1090_v53  ;;  %v804_v56 = vpop.f32.mrf.mxu0 }
 0x18f   : > { %v900_v57 = vpop.f32.mrf.mxu1  ;;  %v805_v58 = vadd.f32 %v2411_v7, %v804_v56  ;;  %v1445_v60 = vsel %vm1189_vm15, %v994_v52, %v1317_v54 }
 0x190   : > { %v901_v59 = vadd.f32 %v2411_v7, %v900_v57  ;;  %v1477_v61 = vsel %vm1221_vm0, %v1090_v53, %v1349_v55  ;;  %1573 = vst [vmem:[%s2162_s8 + $0x2f0] sm:$0xff] %v1445_v60 }
 0x191   : > { %vm1126_vm2 = vcmp.gt.f32.partialorder %v805_v58, 0.0  ;;  %v1254_v62 = vmul.f32 0.2, %v805_v58  ;;  %1605 = vst [vmem:[%s2162_s8 + $0x3f0] sm:$0xff] %v1477_v61 }
 0x192   : > { %vm1158_vm3 = vcmp.gt.f32.partialorder %v901_v59, 0.0  ;;  %v1286_v63 = vmul.f32 0.2, %v901_v59  ;;  %v996_v2 = vpop.f32.mrf.mxu2 }
 0x193   : > { %v1382_v0 = vsel %vm1126_vm2, %v805_v58, %v1254_v62  ;;  %v1092_v3 = vpop.f32.mrf.mxu3  ;;  %v997_v5 = vadd.f32 %v2411_v7, %v996_v2 }
 0x194   : > { %1510 = vst [vmem:[%s2162_s8 + $0xf8] sm:$0xff] %v1382_v0  ;;  %v1414_v4 = vsel %vm1158_vm3, %v901_v59, %v1286_v63  ;;  %v1093_v6 = vadd.f32 %v2411_v7, %v1092_v3 }
 0x195   : > { %1542 = vst [vmem:[%s2162_s8 + $0x1f8] sm:$0xff] %v1414_v4  ;;  %vm1190_vm4 = vcmp.gt.f32.partialorder %v997_v5, 0.0  ;;  %v1318_v8 = vmul.f32 0.2, %v997_v5 }
 0x196   : > { %vm1222_vm5 = vcmp.gt.f32.partialorder %v1093_v6, 0.0  ;;  %v1350_v9 = vmul.f32 0.2, %v1093_v6 }
 0x197   : > { %v1446_v1 = vsel %vm1190_vm4, %v997_v5, %v1318_v8 }
 0x198   : > { %v1478_v10 = vsel %vm1222_vm5, %v1093_v6, %v1350_v9  ;;  %1574 = vst [vmem:[%s2162_s8 + $0x2f8] sm:$0xff] %v1446_v1 }
 0x199   : > { %1606 = vst [vmem:[%s2162_s8 + $0x3f8] sm:$0xff] %v1478_v10 }
 0x19a   : > { %1900 = shalt.err (!%p1897_p3)
}
 0x19b   : > { %s1937_s4 = smov 128   ;;  %s1938_s7 = smov 8  }
 0x19c   : > { %1830 = dma.vmem_to_hbm [thread:$0]  (%p1997_p5), %s1621_s16, 16384, %s1623_s24, %s1608_s25, %s1937_s4, %s1937_s4, %s1938_s7  }
 0x19d PF: > { %p1836_p4 = scmp.ge.s32.totalorder %s1935_s15, 2  ;;  %s1637_s8 = sand.u32 1, %s1923_s12  }
 0x19e   : > { %s1638_s9 = scalar_lea.sflag [#allocation3], %s1637_s8 }
 0x19f   : > { %p1833_p7 = pnand %p1836_p4, %p2001_p6 }
 0x1a1   : > { %p1834_p8 = pneg %p1833_p7 }
 0x1a3   : > { %1918 = dma.done.wait (%p1834_p8), %s1638_s9, 16384  }
 0x1a4   : > { %1920 = vsyncadd (%p1834_p8), %s1638_s9, 4294950912  ;;  %p13_p9 = scmp.ge.s32.totalorder %s1984_s18, 4   ;;  %s2583_s12 = smov %s1927_s13 }
 0x1a5   : > { %s2584_s13 = smov %s1931_s14  ;;  %s2585_s14 = smov %s1995_s21 }
 0x1a6   : > { %s2586_s15 = smov %s1984_s18  ;;  %15 = sbr.rel (!%p13_p9) target bundleno = 3 (0x3), region = 67 }
 0x1ab   :  { %1644 = vsyncpa [#allocation3], 1 }
 0x1ac   :  { %1646 = vsyncpa [#allocation3 + $0x1], 1 }

</bundles_post_ra>
